<compile_context>
chip_gen: v7x
topology: tpu7x:2x2x1
jax: 0.10.0
libtpu: 0.0.40
codegen_flags: <defaults>
</compile_context>

<pallas_src>
import jax
import jax.numpy as jnp
from jax.experimental import pallas as pl
from jax.experimental.pallas import tpu as pltpu

HIDDEN_DIM = 16
NUM_CLASSES = 10
PAD = 128  # lane padding on each side of the flattened activation scratch


def fused_forward(x_cols, w1, s1, t1, w2t, b2, wfc, bfc, tapmask, pool_mat,
                  *, N, H, W):
    """Fused conv1+bn1 -> conv2 -> global-avg-pool -> fc, single grid step.

    x_cols:   (K1p, N*H*W)   hoisted conv1 im2col (rows: tap-major, cin-minor; zero-padded to K1p)
    w1:       (C, K1p)       conv1 weight in matching im2col layout
    s1, t1:   (C, 1)         folded BN scale / shift (conv1 bias folded into shift)
    w2t:      (9, C, C)      conv2 weight per tap: [tap, cout, cin]
    b2:       (C, 1)         conv2 bias (added after the linear pool)
    wfc:      (K, C)         fc weight (PyTorch layout)
    bfc:      (K, 1)         fc bias
    tapmask:  (9, N*H*W)     {0,1} border mask per tap over the flattened spatial axis
    pool_mat: (N*H*W, N)     block-diagonal 1/(H*W) pooling matrix
    returns:  (N, K) logits
    """
    C = w1.shape[0]
    K1p = w1.shape[1]
    NHW = x_cols.shape[1]
    K = wfc.shape[0]

    def kernel(xcols_ref, w1_ref, s1_ref, t1_ref, w2t_ref, b2_ref,
               wfc_ref, bfc_ref, mask_ref, pool_ref, o_ref, act_ref):
        # ---- conv1 (+ folded BN affine): one im2col GEMM, output (C, N*H*W) ----
        a1 = jnp.dot(w1_ref[...], xcols_ref[...],
                     preferred_element_type=jnp.float32)
        a1 = a1 * s1_ref[...] + t1_ref[...]          # per-channel scale/shift (lane bcast)

        # ---- stash activation in lane-padded scratch (aligned, dense store) ----
        # Only the two 128-lane pad borders need to be zeroed (the shifted views
        # that read them are multiplied by a 0 mask, but keep them finite).
        act_ref[:, pl.ds(0, PAD)] = jnp.zeros((C, PAD), jnp.float32)
        act_ref[:, pl.ds(PAD + NHW, PAD)] = jnp.zeros((C, PAD), jnp.float32)
        act_ref[:, pl.ds(PAD, NHW)] = a1

        # ---- conv2: 9 shifted lane-views x per-tap (C,C) weights, masked borders ----
        acc = None
        for ky in range(3):
            for kx in range(3):
                tap = ky * 3 + kx
                off = (ky - 1) * W + (kx - 1)        # flat-spatial shift of this tap
                s = act_ref[:, pl.ds(PAD + off, NHW)]
                if tap != 4:                         # center tap needs no mask
                    s = s * mask_ref[pl.ds(tap, 1), :]
                contrib = jnp.dot(w2t_ref[tap], s,
                                  preferred_element_type=jnp.float32)
                acc = contrib if acc is None else acc + contrib

        # ---- global average pool (block-diag matmul) + conv2 bias ----
        pooled = jnp.dot(acc, pool_ref[...],
                         preferred_element_type=jnp.float32) + b2_ref[...]   # (C, N)

        # ---- flatten -> dropout (identity in eval) -> fc ----
        o_ref[...] = jnp.dot(wfc_ref[...], pooled,
                             preferred_element_type=jnp.float32) + bfc_ref[...]  # (K, N)

    out_t = pl.pallas_call(
        kernel,
        out_shape=jax.ShapeDtypeStruct((K, N), jnp.float32),
        grid_spec=pltpu.PrefetchScalarGridSpec(
            num_scalar_prefetch=0,
            grid=(1,),
            in_specs=[
                pl.BlockSpec((K1p, NHW), lambda i: (0, 0)),
                pl.BlockSpec((C, K1p), lambda i: (0, 0)),
                pl.BlockSpec((C, 1), lambda i: (0, 0)),
                pl.BlockSpec((C, 1), lambda i: (0, 0)),
                pl.BlockSpec((9, C, C), lambda i: (0, 0, 0)),
                pl.BlockSpec((C, 1), lambda i: (0, 0)),
                pl.BlockSpec((K, C), lambda i: (0, 0)),
                pl.BlockSpec((K, 1), lambda i: (0, 0)),
                pl.BlockSpec((9, NHW), lambda i: (0, 0)),
                pl.BlockSpec((NHW, N), lambda i: (0, 0)),
            ],
            out_specs=pl.BlockSpec((K, N), lambda i: (0, 0)),
            scratch_shapes=[pltpu.VMEM((C, 2 * PAD + NHW), jnp.float32)],
        ),
        compiler_params=pltpu.CompilerParams(dimension_semantics=("arbitrary",)),
    )(x_cols, w1, s1, t1, w2t, b2, wfc, bfc, tapmask, pool_mat)
    return out_t.T  # (N, K)


def model_forward(x_nchw, params):
    """Forward pass; parameters are in native PyTorch layouts."""
    x = x_nchw.astype(jnp.float32)
    N, Cin, H, W = x.shape
    C = params["conv2_w"].shape[0]
    K = params["fc_w"].shape[0]
    HW = H * W
    eps = 1e-5

    # Fold eval-mode BatchNorm AND conv1 bias into per-channel scale/shift.
    scale1 = params["bn_gamma"] / jnp.sqrt(params["bn_var"] + eps)
    shift1 = params["bn_beta"] + (params["conv1_b"] - params["bn_mean"]) * scale1

    # ---- hoisted conv1 padding + im2col (pure layout, done once by XLA) ----
    xp = jnp.pad(x, ((0, 0), (0, 0), (1, 1), (1, 1)))
    cols = jnp.stack(
        [xp[:, :, ky:ky + H, kx:kx + W] for ky in range(3) for kx in range(3)],
        axis=0)                                           # (9, N, Cin, H, W)
    cols = cols.transpose(0, 2, 1, 3, 4).reshape(9 * Cin, N * HW)
    K1 = 9 * Cin
    K1p = ((K1 + 7) // 8) * 8                             # pad contraction dim to sublane multiple
    x_cols = jnp.pad(cols, ((0, K1p - K1), (0, 0)))

    # conv1 weight (Cout, Cin, kh, kw) -> (Cout, 9*Cin) matching the im2col row order.
    w1 = params["conv1_w"].transpose(0, 2, 3, 1).reshape(C, K1)
    w1 = jnp.pad(w1, ((0, 0), (0, K1p - K1)))

    # conv2 weight -> per-tap (Cout, Cin) matrices.
    w2t = params["conv2_w"].transpose(2, 3, 0, 1).reshape(9, C, C)

    # Per-tap border masks over the flattened (n, h, w) axis.
    hh = jnp.arange(H)
    ww = jnp.arange(W)
    masks = []
    for ky in range(3):
        dy = ky - 1
        for kx in range(3):
            dx = kx - 1
            row_ok = (hh + dy >= 0) & (hh + dy < H)       # (H,)
            col_ok = (ww + dx >= 0) & (ww + dx < W)       # (W,)
            m = (row_ok[:, None] & col_ok[None, :]).astype(jnp.float32)  # (H, W)
            masks.append(jnp.tile(m.reshape(-1), (N,)))   # (N*H*W,)
    tapmask = jnp.stack(masks, axis=0)                    # (9, N*H*W)

    # Block-diagonal global-average-pool matrix.
    pool_mat = ((jnp.arange(N * HW)[:, None] // HW) ==
                jnp.arange(N)[None, :]).astype(jnp.float32) / HW   # (N*H*W, N)

    return fused_forward(
        x_cols, w1,
        scale1.reshape(C, 1), shift1.reshape(C, 1),
        w2t, params["conv2_b"].reshape(C, 1),
        params["fc_w"], params["fc_b"].reshape(K, 1),
        tapmask, pool_mat,
        N=N, H=H, W=W,
    )


if __name__ == "__main__":
    key = jax.random.PRNGKey(0)
    ks = jax.random.split(key, 12)

    N, Cin, H, W = 2, 3, 16, 16
    x_nchw = jax.random.normal(ks[0], (N, Cin, H, W), jnp.float32)

    # Parameters generated in native PyTorch layouts; permuted inside model_forward.
    params = {
        "conv1_w": 0.1 * jax.random.normal(ks[1], (HIDDEN_DIM, Cin, 3, 3), jnp.float32),
        "conv1_b": 0.1 * jax.random.normal(ks[2], (HIDDEN_DIM,), jnp.float32),
        "bn_gamma": 1.0 + 0.1 * jax.random.normal(ks[3], (HIDDEN_DIM,), jnp.float32),
        "bn_beta": 0.1 * jax.random.normal(ks[4], (HIDDEN_DIM,), jnp.float32),
        "bn_mean": 0.1 * jax.random.normal(ks[5], (HIDDEN_DIM,), jnp.float32),
        "bn_var": jnp.abs(1.0 + 0.1 * jax.random.normal(ks[6], (HIDDEN_DIM,), jnp.float32)),
        "conv2_w": 0.1 * jax.random.normal(ks[7], (HIDDEN_DIM, HIDDEN_DIM, 3, 3), jnp.float32),
        "conv2_b": 0.1 * jax.random.normal(ks[8], (HIDDEN_DIM,), jnp.float32),
        "fc_w": 0.1 * jax.random.normal(ks[9], (NUM_CLASSES, HIDDEN_DIM), jnp.float32),
        "fc_b": 0.1 * jax.random.normal(ks[10], (NUM_CLASSES,), jnp.float32),
    }
    # NOTE: `last_conv` in the PyTorch module is unused in forward(), so it is omitted.

    fwd = jax.jit(model_forward)
    out = fwd(x_nchw, params)
    jax.block_until_ready(out)
    assert out.shape == (N, NUM_CLASSES) and out.dtype == jnp.float32
    print("KERNEL_OK")
</pallas_src>

<mosaic_0001>
module attributes {stable_mosaic.version = 11 : i64} {
  func.func @kernel(%arg0: i32, %arg1: memref<32x512xf32, #tpu.memory_space<vmem>>, %arg2: memref<16x32xf32, #tpu.memory_space<vmem>>, %arg3: memref<16x1xf32, #tpu.memory_space<vmem>>, %arg4: memref<16x1xf32, #tpu.memory_space<vmem>>, %arg5: memref<9x16x16xf32, #tpu.memory_space<vmem>>, %arg6: memref<16x1xf32, #tpu.memory_space<vmem>>, %arg7: memref<10x16xf32, #tpu.memory_space<vmem>>, %arg8: memref<10x1xf32, #tpu.memory_space<vmem>>, %arg9: memref<9x512xf32, #tpu.memory_space<vmem>>, %arg10: memref<512x2xf32, #tpu.memory_space<vmem>>, %arg11: memref<10x2xf32, #tpu.memory_space<vmem>>, %arg12: memref<16x768xf32, #tpu.memory_space<vmem>>) attributes {dimension_semantics = [#tpu.dimension_semantics<arbitrary>], iteration_bounds = array<i64: 1>, scalar_prefetch = 0 : i64, scratch_operands = 1 : i64, tpu.core_type = #tpu.core_type<tc>, window_params = [{pipeline_mode = #tpu.pipeline_mode<synchronous>, transform_indices = @transform_0, window_bounds = array<i64: 32, 512>}, {pipeline_mode = #tpu.pipeline_mode<synchronous>, transform_indices = @transform_1, window_bounds = array<i64: 16, 32>}, {pipeline_mode = #tpu.pipeline_mode<synchronous>, transform_indices = @transform_2, window_bounds = array<i64: 16, 1>}, {pipeline_mode = #tpu.pipeline_mode<synchronous>, transform_indices = @transform_3, window_bounds = array<i64: 16, 1>}, {pipeline_mode = #tpu.pipeline_mode<synchronous>, transform_indices = @transform_4, window_bounds = array<i64: 9, 16, 16>}, {pipeline_mode = #tpu.pipeline_mode<synchronous>, transform_indices = @transform_5, window_bounds = array<i64: 16, 1>}, {pipeline_mode = #tpu.pipeline_mode<synchronous>, transform_indices = @transform_6, window_bounds = array<i64: 10, 16>}, {pipeline_mode = #tpu.pipeline_mode<synchronous>, transform_indices = @transform_7, window_bounds = array<i64: 10, 1>}, {pipeline_mode = #tpu.pipeline_mode<synchronous>, transform_indices = @transform_8, window_bounds = array<i64: 9, 512>}, {pipeline_mode = #tpu.pipeline_mode<synchronous>, transform_indices = @transform_9, window_bounds = array<i64: 512, 2>}, {pipeline_mode = #tpu.pipeline_mode<synchronous>, transform_indices = @transform_10, window_bounds = array<i64: 10, 2>}]} {
    %c0 = arith.constant 0 : index
    %c0_0 = arith.constant 0 : index
    %0 = vector.load %arg2[%c0, %c0_0] : memref<16x32xf32, #tpu.memory_space<vmem>>, vector<16x32xf32>
    %c0_1 = arith.constant 0 : index
    %c0_2 = arith.constant 0 : index
    %1 = vector.load %arg1[%c0_1, %c0_2] : memref<32x512xf32, #tpu.memory_space<vmem>>, vector<32x512xf32>
    %cst = arith.constant dense<0.000000e+00> : vector<16x512xf32>
    %2 = tpu.matmul %0, %1, %cst {dimension_numbers = #tpu.dot_dimension_numbers<[1], [0], [0], [1], [0, 0, 1, 1], [], []>} : vector<16x32xf32>, vector<32x512xf32>, vector<16x512xf32> -> vector<16x512xf32>
    %c0_3 = arith.constant 0 : index
    %c0_4 = arith.constant 0 : index
    %3 = vector.load %arg3[%c0_3, %c0_4] : memref<16x1xf32, #tpu.memory_space<vmem>>, vector<16x1xf32>
    %4 = vector.broadcast %3 : vector<16x1xf32> to vector<16x512xf32>
    %5 = arith.mulf %2, %4 : vector<16x512xf32>
    %c0_5 = arith.constant 0 : index
    %c0_6 = arith.constant 0 : index
    %6 = vector.load %arg4[%c0_5, %c0_6] : memref<16x1xf32, #tpu.memory_space<vmem>>, vector<16x1xf32>
    %7 = vector.broadcast %6 : vector<16x1xf32> to vector<16x512xf32>
    %8 = arith.addf %5, %7 : vector<16x512xf32>
    %cst_7 = arith.constant 0.000000e+00 : f32
    %9 = vector.broadcast %cst_7 : f32 to vector<16x128xf32>
    %c0_8 = arith.constant 0 : index
    %c0_9 = arith.constant 0 : index
    %10 = vector.load %arg12[%c0_8, %c0_9] : memref<16x768xf32, #tpu.memory_space<vmem>>, vector<16x128xf32>
    tpu.vector_store %arg12[%c0_8, %c0_9], %9 {strides = array<i32>} : memref<16x768xf32, #tpu.memory_space<vmem>>, vector<16x128xf32>,
    %cst_10 = arith.constant 0.000000e+00 : f32
    %11 = vector.broadcast %cst_10 : f32 to vector<16x128xf32>
    %c0_11 = arith.constant 0 : index
    %c640 = arith.constant 640 : index
    %12 = vector.load %arg12[%c0_11, %c640] : memref<16x768xf32, #tpu.memory_space<vmem>>, vector<16x128xf32>
    tpu.vector_store %arg12[%c0_11, %c640], %11 {strides = array<i32>} : memref<16x768xf32, #tpu.memory_space<vmem>>, vector<16x128xf32>,
    %c0_12 = arith.constant 0 : index
    %c128 = arith.constant 128 : index
    %13 = vector.load %arg12[%c0_12, %c128] : memref<16x768xf32, #tpu.memory_space<vmem>>, vector<16x512xf32>
    tpu.vector_store %arg12[%c0_12, %c128], %8 {strides = array<i32>} : memref<16x768xf32, #tpu.memory_space<vmem>>, vector<16x512xf32>,
    %c0_13 = arith.constant 0 : index
    %c111 = arith.constant 111 : index
    %14 = vector.load %arg12[%c0_13, %c111] : memref<16x768xf32, #tpu.memory_space<vmem>>, vector<16x512xf32>
    %c0_14 = arith.constant 0 : index
    %c0_15 = arith.constant 0 : index
    %15 = vector.load %arg9[%c0_14, %c0_15] : memref<9x512xf32, #tpu.memory_space<vmem>>, vector<1x512xf32>
    %16 = vector.broadcast %15 : vector<1x512xf32> to vector<16x512xf32>
    %17 = arith.mulf %14, %16 : vector<16x512xf32>
    %c0_16 = arith.constant 0 : index
    %c0_17 = arith.constant 0 : index
    %c0_18 = arith.constant 0 : index
    %18 = vector.load %arg5[%c0_16, %c0_17, %c0_18] : memref<9x16x16xf32, #tpu.memory_space<vmem>>, vector<1x16x16xf32>
    %19 = vector.shape_cast %18 : vector<1x16x16xf32> to vector<16x16xf32>
    %cst_19 = arith.constant dense<0.000000e+00> : vector<16x512xf32>
    %20 = tpu.matmul %19, %17, %cst_19 {dimension_numbers = #tpu.dot_dimension_numbers<[1], [0], [0], [1], [0, 0, 1, 1], [], []>} : vector<16x16xf32>, vector<16x512xf32>, vector<16x512xf32> -> vector<16x512xf32>
    %c0_20 = arith.constant 0 : index
    %c112 = arith.constant 112 : index
    %21 = vector.load %arg12[%c0_20, %c112] : memref<16x768xf32, #tpu.memory_space<vmem>>, vector<16x512xf32>
    %c1 = arith.constant 1 : index
    %c0_21 = arith.constant 0 : index
    %22 = vector.load %arg9[%c1, %c0_21] : memref<9x512xf32, #tpu.memory_space<vmem>>, vector<1x512xf32>
    %23 = vector.broadcast %22 : vector<1x512xf32> to vector<16x512xf32>
    %24 = arith.mulf %21, %23 : vector<16x512xf32>
    %c1_22 = arith.constant 1 : index
    %c0_23 = arith.constant 0 : index
    %c0_24 = arith.constant 0 : index
    %25 = vector.load %arg5[%c1_22, %c0_23, %c0_24] : memref<9x16x16xf32, #tpu.memory_space<vmem>>, vector<1x16x16xf32>
    %26 = vector.shape_cast %25 : vector<1x16x16xf32> to vector<16x16xf32>
    %cst_25 = arith.constant dense<0.000000e+00> : vector<16x512xf32>
    %27 = tpu.matmul %26, %24, %cst_25 {dimension_numbers = #tpu.dot_dimension_numbers<[1], [0], [0], [1], [0, 0, 1, 1], [], []>} : vector<16x16xf32>, vector<16x512xf32>, vector<16x512xf32> -> vector<16x512xf32>
    %28 = arith.addf %20, %27 : vector<16x512xf32>
    %c0_26 = arith.constant 0 : index
    %c113 = arith.constant 113 : index
    %29 = vector.load %arg12[%c0_26, %c113] : memref<16x768xf32, #tpu.memory_space<vmem>>, vector<16x512xf32>
    %c2 = arith.constant 2 : index
    %c0_27 = arith.constant 0 : index
    %30 = vector.load %arg9[%c2, %c0_27] : memref<9x512xf32, #tpu.memory_space<vmem>>, vector<1x512xf32>
    %31 = vector.broadcast %30 : vector<1x512xf32> to vector<16x512xf32>
    %32 = arith.mulf %29, %31 : vector<16x512xf32>
    %c2_28 = arith.constant 2 : index
    %c0_29 = arith.constant 0 : index
    %c0_30 = arith.constant 0 : index
    %33 = vector.load %arg5[%c2_28, %c0_29, %c0_30] : memref<9x16x16xf32, #tpu.memory_space<vmem>>, vector<1x16x16xf32>
    %34 = vector.shape_cast %33 : vector<1x16x16xf32> to vector<16x16xf32>
    %cst_31 = arith.constant dense<0.000000e+00> : vector<16x512xf32>
    %35 = tpu.matmul %34, %32, %cst_31 {dimension_numbers = #tpu.dot_dimension_numbers<[1], [0], [0], [1], [0, 0, 1, 1], [], []>} : vector<16x16xf32>, vector<16x512xf32>, vector<16x512xf32> -> vector<16x512xf32>
    %36 = arith.addf %28, %35 : vector<16x512xf32>
    %c0_32 = arith.constant 0 : index
    %c127 = arith.constant 127 : index
    %37 = vector.load %arg12[%c0_32, %c127] : memref<16x768xf32, #tpu.memory_space<vmem>>, vector<16x512xf32>
    %c3 = arith.constant 3 : index
    %c0_33 = arith.constant 0 : index
    %38 = vector.load %arg9[%c3, %c0_33] : memref<9x512xf32, #tpu.memory_space<vmem>>, vector<1x512xf32>
    %39 = vector.broadcast %38 : vector<1x512xf32> to vector<16x512xf32>
    %40 = arith.mulf %37, %39 : vector<16x512xf32>
    %c3_34 = arith.constant 3 : index
    %c0_35 = arith.constant 0 : index
    %c0_36 = arith.constant 0 : index
    %41 = vector.load %arg5[%c3_34, %c0_35, %c0_36] : memref<9x16x16xf32, #tpu.memory_space<vmem>>, vector<1x16x16xf32>
    %42 = vector.shape_cast %41 : vector<1x16x16xf32> to vector<16x16xf32>
    %cst_37 = arith.constant dense<0.000000e+00> : vector<16x512xf32>
    %43 = tpu.matmul %42, %40, %cst_37 {dimension_numbers = #tpu.dot_dimension_numbers<[1], [0], [0], [1], [0, 0, 1, 1], [], []>} : vector<16x16xf32>, vector<16x512xf32>, vector<16x512xf32> -> vector<16x512xf32>
    %44 = arith.addf %36, %43 : vector<16x512xf32>
    %c0_38 = arith.constant 0 : index
    %c128_39 = arith.constant 128 : index
    %45 = vector.load %arg12[%c0_38, %c128_39] : memref<16x768xf32, #tpu.memory_space<vmem>>, vector<16x512xf32>
    %c4 = arith.constant 4 : index
    %c0_40 = arith.constant 0 : index
    %c0_41 = arith.constant 0 : index
    %46 = vector.load %arg5[%c4, %c0_40, %c0_41] : memref<9x16x16xf32, #tpu.memory_space<vmem>>, vector<1x16x16xf32>
    %47 = vector.shape_cast %46 : vector<1x16x16xf32> to vector<16x16xf32>
    %cst_42 = arith.constant dense<0.000000e+00> : vector<16x512xf32>
    %48 = tpu.matmul %47, %45, %cst_42 {dimension_numbers = #tpu.dot_dimension_numbers<[1], [0], [0], [1], [0, 0, 1, 1], [], []>} : vector<16x16xf32>, vector<16x512xf32>, vector<16x512xf32> -> vector<16x512xf32>
    %49 = arith.addf %44, %48 : vector<16x512xf32>
    %c0_43 = arith.constant 0 : index
    %c129 = arith.constant 129 : index
    %50 = vector.load %arg12[%c0_43, %c129] : memref<16x768xf32, #tpu.memory_space<vmem>>, vector<16x512xf32>
    %c5 = arith.constant 5 : index
    %c0_44 = arith.constant 0 : index
    %51 = vector.load %arg9[%c5, %c0_44] : memref<9x512xf32, #tpu.memory_space<vmem>>, vector<1x512xf32>
    %52 = vector.broadcast %51 : vector<1x512xf32> to vector<16x512xf32>
    %53 = arith.mulf %50, %52 : vector<16x512xf32>
    %c5_45 = arith.constant 5 : index
    %c0_46 = arith.constant 0 : index
    %c0_47 = arith.constant 0 : index
    %54 = vector.load %arg5[%c5_45, %c0_46, %c0_47] : memref<9x16x16xf32, #tpu.memory_space<vmem>>, vector<1x16x16xf32>
    %55 = vector.shape_cast %54 : vector<1x16x16xf32> to vector<16x16xf32>
    %cst_48 = arith.constant dense<0.000000e+00> : vector<16x512xf32>
    %56 = tpu.matmul %55, %53, %cst_48 {dimension_numbers = #tpu.dot_dimension_numbers<[1], [0], [0], [1], [0, 0, 1, 1], [], []>} : vector<16x16xf32>, vector<16x512xf32>, vector<16x512xf32> -> vector<16x512xf32>
    %57 = arith.addf %49, %56 : vector<16x512xf32>
    %c0_49 = arith.constant 0 : index
    %c143 = arith.constant 143 : index
    %58 = vector.load %arg12[%c0_49, %c143] : memref<16x768xf32, #tpu.memory_space<vmem>>, vector<16x512xf32>
    %c6 = arith.constant 6 : index
    %c0_50 = arith.constant 0 : index
    %59 = vector.load %arg9[%c6, %c0_50] : memref<9x512xf32, #tpu.memory_space<vmem>>, vector<1x512xf32>
    %60 = vector.broadcast %59 : vector<1x512xf32> to vector<16x512xf32>
    %61 = arith.mulf %58, %60 : vector<16x512xf32>
    %c6_51 = arith.constant 6 : index
    %c0_52 = arith.constant 0 : index
    %c0_53 = arith.constant 0 : index
    %62 = vector.load %arg5[%c6_51, %c0_52, %c0_53] : memref<9x16x16xf32, #tpu.memory_space<vmem>>, vector<1x16x16xf32>
    %63 = vector.shape_cast %62 : vector<1x16x16xf32> to vector<16x16xf32>
    %cst_54 = arith.constant dense<0.000000e+00> : vector<16x512xf32>
    %64 = tpu.matmul %63, %61, %cst_54 {dimension_numbers = #tpu.dot_dimension_numbers<[1], [0], [0], [1], [0, 0, 1, 1], [], []>} : vector<16x16xf32>, vector<16x512xf32>, vector<16x512xf32> -> vector<16x512xf32>
    %65 = arith.addf %57, %64 : vector<16x512xf32>
    %c0_55 = arith.constant 0 : index
    %c144 = arith.constant 144 : index
    %66 = vector.load %arg12[%c0_55, %c144] : memref<16x768xf32, #tpu.memory_space<vmem>>, vector<16x512xf32>
    %c7 = arith.constant 7 : index
    %c0_56 = arith.constant 0 : index
    %67 = vector.load %arg9[%c7, %c0_56] : memref<9x512xf32, #tpu.memory_space<vmem>>, vector<1x512xf32>
    %68 = vector.broadcast %67 : vector<1x512xf32> to vector<16x512xf32>
    %69 = arith.mulf %66, %68 : vector<16x512xf32>
    %c7_57 = arith.constant 7 : index
    %c0_58 = arith.constant 0 : index
    %c0_59 = arith.constant 0 : index
    %70 = vector.load %arg5[%c7_57, %c0_58, %c0_59] : memref<9x16x16xf32, #tpu.memory_space<vmem>>, vector<1x16x16xf32>
    %71 = vector.shape_cast %70 : vector<1x16x16xf32> to vector<16x16xf32>
    %cst_60 = arith.constant dense<0.000000e+00> : vector<16x512xf32>
    %72 = tpu.matmul %71, %69, %cst_60 {dimension_numbers = #tpu.dot_dimension_numbers<[1], [0], [0], [1], [0, 0, 1, 1], [], []>} : vector<16x16xf32>, vector<16x512xf32>, vector<16x512xf32> -> vector<16x512xf32>
    %73 = arith.addf %65, %72 : vector<16x512xf32>
    %c0_61 = arith.constant 0 : index
    %c145 = arith.constant 145 : index
    %74 = vector.load %arg12[%c0_61, %c145] : memref<16x768xf32, #tpu.memory_space<vmem>>, vector<16x512xf32>
    %c8 = arith.constant 8 : index
    %c0_62 = arith.constant 0 : index
    %75 = vector.load %arg9[%c8, %c0_62] : memref<9x512xf32, #tpu.memory_space<vmem>>, vector<1x512xf32>
    %76 = vector.broadcast %75 : vector<1x512xf32> to vector<16x512xf32>
    %77 = arith.mulf %74, %76 : vector<16x512xf32>
    %c8_63 = arith.constant 8 : index
    %c0_64 = arith.constant 0 : index
    %c0_65 = arith.constant 0 : index
    %78 = vector.load %arg5[%c8_63, %c0_64, %c0_65] : memref<9x16x16xf32, #tpu.memory_space<vmem>>, vector<1x16x16xf32>
    %79 = vector.shape_cast %78 : vector<1x16x16xf32> to vector<16x16xf32>
    %cst_66 = arith.constant dense<0.000000e+00> : vector<16x512xf32>
    %80 = tpu.matmul %79, %77, %cst_66 {dimension_numbers = #tpu.dot_dimension_numbers<[1], [0], [0], [1], [0, 0, 1, 1], [], []>} : vector<16x16xf32>, vector<16x512xf32>, vector<16x512xf32> -> vector<16x512xf32>
    %81 = arith.addf %73, %80 : vector<16x512xf32>
    %c0_67 = arith.constant 0 : index
    %c0_68 = arith.constant 0 : index
    %82 = vector.load %arg10[%c0_67, %c0_68] : memref<512x2xf32, #tpu.memory_space<vmem>>, vector<512x2xf32>
    %cst_69 = arith.constant dense<0.000000e+00> : vector<16x2xf32>
    %83 = tpu.matmul %81, %82, %cst_69 {dimension_numbers = #tpu.dot_dimension_numbers<[1], [0], [0], [1], [0, 0, 1, 1], [], []>} : vector<16x512xf32>, vector<512x2xf32>, vector<16x2xf32> -> vector<16x2xf32>
    %c0_70 = arith.constant 0 : index
    %c0_71 = arith.constant 0 : index
    %84 = vector.load %arg6[%c0_70, %c0_71] : memref<16x1xf32, #tpu.memory_space<vmem>>, vector<16x1xf32>
    %85 = vector.broadcast %84 : vector<16x1xf32> to vector<16x2xf32>
    %86 = arith.addf %83, %85 : vector<16x2xf32>
    %c0_72 = arith.constant 0 : index
    %c0_73 = arith.constant 0 : index
    %87 = vector.load %arg7[%c0_72, %c0_73] : memref<10x16xf32, #tpu.memory_space<vmem>>, vector<10x16xf32>
    %cst_74 = arith.constant dense<0.000000e+00> : vector<10x2xf32>
    %88 = tpu.matmul %87, %86, %cst_74 {dimension_numbers = #tpu.dot_dimension_numbers<[1], [0], [0], [1], [0, 0, 1, 1], [], []>} : vector<10x16xf32>, vector<16x2xf32>, vector<10x2xf32> -> vector<10x2xf32>
    %c0_75 = arith.constant 0 : index
    %c0_76 = arith.constant 0 : index
    %89 = vector.load %arg8[%c0_75, %c0_76] : memref<10x1xf32, #tpu.memory_space<vmem>>, vector<10x1xf32>
    %90 = vector.broadcast %89 : vector<10x1xf32> to vector<10x2xf32>
    %91 = arith.addf %88, %90 : vector<10x2xf32>
    %c0_77 = arith.constant 0 : index
    %c0_78 = arith.constant 0 : index
    %92 = vector.load %arg11[%c0_77, %c0_78] : memref<10x2xf32, #tpu.memory_space<vmem>>, vector<10x2xf32>
    tpu.vector_store %arg11[%c0_77, %c0_78], %91 {strides = array<i32>} : memref<10x2xf32, #tpu.memory_space<vmem>>, vector<10x2xf32>,
    return
  }
  func.func @transform_0(%arg0: i32) -> (i32, i32) {
    %c0_i32 = arith.constant 0 : i32
    %c0_i32_0 = arith.constant 0 : i32
    %c0_i32_1 = arith.constant 0 : i32
    return %c0_i32, %c0_i32_0 : i32, i32
  }
  func.func @transform_1(%arg0: i32) -> (i32, i32) {
    %c0_i32 = arith.constant 0 : i32
    %c0_i32_0 = arith.constant 0 : i32
    %c0_i32_1 = arith.constant 0 : i32
    return %c0_i32, %c0_i32_0 : i32, i32
  }
  func.func @transform_2(%arg0: i32) -> (i32, i32) {
    %c0_i32 = arith.constant 0 : i32
    %c0_i32_0 = arith.constant 0 : i32
    %c0_i32_1 = arith.constant 0 : i32
    return %c0_i32, %c0_i32_0 : i32, i32
  }
  func.func @transform_3(%arg0: i32) -> (i32, i32) {
    %c0_i32 = arith.constant 0 : i32
    %c0_i32_0 = arith.constant 0 : i32
    %c0_i32_1 = arith.constant 0 : i32
    return %c0_i32, %c0_i32_0 : i32, i32
  }
  func.func @transform_4(%arg0: i32) -> (i32, i32, i32) {
    %c0_i32 = arith.constant 0 : i32
    %c0_i32_0 = arith.constant 0 : i32
    %c0_i32_1 = arith.constant 0 : i32
    %c0_i32_2 = arith.constant 0 : i32
    return %c0_i32, %c0_i32_0, %c0_i32_1 : i32, i32, i32
  }
  func.func @transform_5(%arg0: i32) -> (i32, i32) {
    %c0_i32 = arith.constant 0 : i32
    %c0_i32_0 = arith.constant 0 : i32
    %c0_i32_1 = arith.constant 0 : i32
    return %c0_i32, %c0_i32_0 : i32, i32
  }
  func.func @transform_6(%arg0: i32) -> (i32, i32) {
    %c0_i32 = arith.constant 0 : i32
    %c0_i32_0 = arith.constant 0 : i32
    %c0_i32_1 = arith.constant 0 : i32
    return %c0_i32, %c0_i32_0 : i32, i32
  }
  func.func @transform_7(%arg0: i32) -> (i32, i32) {
    %c0_i32 = arith.constant 0 : i32
    %c0_i32_0 = arith.constant 0 : i32
    %c0_i32_1 = arith.constant 0 : i32
    return %c0_i32, %c0_i32_0 : i32, i32
  }
  func.func @transform_8(%arg0: i32) -> (i32, i32) {
    %c0_i32 = arith.constant 0 : i32
    %c0_i32_0 = arith.constant 0 : i32
    %c0_i32_1 = arith.constant 0 : i32
    return %c0_i32, %c0_i32_0 : i32, i32
  }
  func.func @transform_9(%arg0: i32) -> (i32, i32) {
    %c0_i32 = arith.constant 0 : i32
    %c0_i32_0 = arith.constant 0 : i32
    %c0_i32_1 = arith.constant 0 : i32
    return %c0_i32, %c0_i32_0 : i32, i32
  }
  func.func @transform_10(%arg0: i32) -> (i32, i32) {
    %c0_i32 = arith.constant 0 : i32
    %c0_i32_0 = arith.constant 0 : i32
    %c0_i32_1 = arith.constant 0 : i32
    return %c0_i32, %c0_i32_0 : i32, i32
  }
}

</mosaic_0001>

<bundles_post_ra>
// kernel: model_forward.1
= control target key start
LH: loop header
LB: loop body
LE: loop exit
PB: predicated region body
PF: predicated region fallthrough
CT: control target
= control target key end

     0   :  { %v278_v0 = vlaneseq  ;;  %v3456_v4 = vmov 0.0   ;;  %v3457_v9 = vmov 0   ;;  %vm53_vm0 = vcmask 261120   ;;  %s3460_s21 = smov 113   ;;  %s3461_s24 = smov 127   ;;  %s4542_s0 = inlined_call_operand.vmem [shape: f32[32,512], index: 0, kind: input, shape index: {}]   ;;  %s4543_s3 = inlined_call_operand.vmem [shape: f32[16,1], index: 3, kind: input, shape index: {}]   ;;  %s4544_s2 = inlined_call_operand.vmem [shape: f32[16,1], index: 2, kind: input, shape index: {}]   ;;  %s4545_s1 = inlined_call_operand.vmem [shape: f32[16,32], index: 1, kind: input, shape index: {}]   ;;  %s4546_s8 = inlined_call_operand.vmem [shape: f32[9,512], index: 8, kind: input, shape index: {}]   ;;  %s4547_s5 = inlined_call_operand.vmem [shape: f32[16,1], index: 5, kind: input, shape index: {}]   ;;  %s4548_s7 = inlined_call_operand.vmem [shape: f32[10,1], index: 7, kind: input, shape index: {}]   ;;  %s4549_s4 = inlined_call_operand.vmem [shape: f32[9,16,16], index: 4, kind: input, shape index: {}]   ;;  %s4550_s9 = inlined_call_operand.vmem [shape: f32[512,2], index: 9, kind: input, shape index: {}]   ;;  %s4551_s6 = inlined_call_operand.vmem [shape: f32[10,16], index: 6, kind: input, shape index: {}]   ;;  %s4552_s10 = inlined_call_operand.vmem [shape: f32[10,2], index: 10, kind: output, shape index: {}]  }
   0x1   :  { %v38_v1 = vld [vmem:[%s4542_s0 + $0x8] sm:$0xff]  ;;  %v40_v3 = vld [vmem:[%s4542_s0 + $0x18] sm:$0xff]  ;;  %124 = vmatprep.mubr.f32.mxu0 %v3456_v4  ;;  %201 = vmatprep.mubr.f32.mxu1 %v3456_v4  ;;  %v37_v7 = vld [vmem:[%s4542_s0] sm:$0xff]  ;;  %s3462_s27 = smov 1   ;;  %s3463_s30 = smov 15   ;;  %vm350_vm1 = vcmask 916480  }
   0x2   :  { %v42_v2 = vld [vmem:[%s4542_s0 + $0x28] sm:$0xff]  ;;  %v44_v6 = vld [vmem:[%s4542_s0 + $0x38] sm:$0xff]  ;;  %v41_v8 = vld [vmem:[%s4542_s0 + $0x20] sm:$0xff]  ;;  %3255 = vset.pattern.permute.xlu1 %v3457_v9  ;;  %3254 = vset.pattern.permute.xlu0 %v3457_v9  ;;  %v279_v19 = vshrl.u32 %v278_v0, 7  ;;  %s3464_s12 = smov 16   ;;  %s3465_s15 = smov 17  }
   0x3   :  { %v3024_v5 = vpack.c.bf16 %v42_v2, %v38_v1  ;;  %v3032_v10 = vpack.c.bf16 %v44_v6, %v40_v3  ;;  %v3026_v11 = vpack.c.bf16 %v41_v8, %v37_v7  ;;  %v39_v12 = vld [vmem:[%s4542_s0 + $0x10] sm:$0xff]  ;;  %v46_v14 = vld [vmem:[%s4542_s0 + $0x48] sm:$0xff]  ;;  %v48_v17 = vld [vmem:[%s4542_s0 + $0x58] sm:$0xff]  ;;  %vm302_vm2 = vcmask 908288  }
   0x4   :  { %v43_v13 = vld [vmem:[%s4542_s0 + $0x30] sm:$0xff]  ;;  %v50_v16 = vld [vmem:[%s4542_s0 + $0x68] sm:$0xff]  ;;  %v52_v18 = vld [vmem:[%s4542_s0 + $0x78] sm:$0xff]  ;;  %v3577_v30 = vsub.s32 1, %v279_v19  ;;  %v3588_v34 = vsub.s32 0, %v279_v19  ;;  %v3595_v37 = vsub.s32 3, %v279_v19 }
   0x5   :  { %3025 = vmatprep.subr.bf16.mxu0 %v3024_v5  ;;  %v3034_v15 = vpack.c.bf16 %v43_v13, %v39_v12  ;;  %3033 = vmatprep.subr.bf16.mxu1 %v3032_v10  ;;  %v3028_v20 = vpack.c.bf16 %v50_v16, %v46_v14  ;;  %v3036_v21 = vpack.c.bf16 %v52_v18, %v48_v17  ;;  %v45_v22 = vld [vmem:[%s4542_s0 + $0x40] sm:$0xff]  ;;  %v47_v24 = vld [vmem:[%s4542_s0 + $0x50] sm:$0xff]  ;;  %v235_v32 = vld [vmem:[%s4543_s3 + $0x8] sm:$0xff]  ;;  %v3604_v40 = vsub.s32 2, %v279_v19 }
   0x6   :  { %3027 = vmatpush1.bf16.msra.mxu0 %v3026_v11  ;;  %v49_v23 = vld [vmem:[%s4542_s0 + $0x60] sm:$0xff]  ;;  %v51_v26 = vld [vmem:[%s4542_s0 + $0x70] sm:$0xff]  ;;  %v215_v35 = vld [vmem:[%s4544_s2 + $0x8] sm:$0xff]  ;;  %vm813_vm3 = vcmask 924672   ;;  %vm1077_vm4 = vcmask 1039360   ;;  %vm1129_vm5 = vcmask 7168  }
   0x7   :  { %3035 = vmatpush1.bf16.msra.mxu1 %v3034_v15  ;;  %v3030_v25 = vpack.c.bf16 %v49_v23, %v45_v22  ;;  %3029 = vmatprep.subr.bf16.mxu0 %v3028_v20  ;;  %v3038_v27 = vpack.c.bf16 %v51_v26, %v47_v24  ;;  %v234_v28 = vld [vmem:[%s4543_s3] sm:$0xff]  ;;  %v36_v38 = vld [vmem:[%s4545_s1 + $0x8] sm:$0xff]  ;;  %vm865_vm6 = vcmask 121856   ;;  %vm402_vm7 = vcmask 130048  }
   0x8   :  { %3037 = vmatprep.subr.bf16.mxu1 %v3036_v21  ;;  %v214_v29 = vld [vmem:[%s4544_s2] sm:$0xff]  ;;  %238 = vperm.xlu1 %3255, %v234_v28   ;;  %s3458_s2 = smov 112   ;;  %vm609_vm8 = vcmask 138240   ;;  %vm2866_vm9 = vcmask 9216   ;;  %vm2864_vm10 = vcmask 15360  }
   0x9   :  { %218 = vperm.xlu0 %3254, %v214_v29   ;;  %v35_v31 = vld [vmem:[%s4545_s1] sm:$0xff]  ;;  %s3459_s1 = smov 111  }
   0xa   :  { %3031 = vmatpush1.bf16.msra.mxu0 %v3030_v25  ;;  %v2876_v33 = vld [vmem:[%s4546_s8 + $0x1] ss:$8 sm:$0xf]  ;;  %v276_v42 = vld [vmem:[%s4546_s8] ss:$8 sm:$0xf] }
   0xb   :  { %3039 = vmatpush1.bf16.msra.mxu1 %v3038_v27  ;;  %v333_v36 = vrot.slane %v2876_v33, %v3577_v30  ;;  %v329_v39 = vrot.slane %v2876_v33, %v3588_v34  ;;  %v341_v41 = vrot.slane %v2876_v33, %v3595_v37  ;;  %v337_v43 = vrot.slane %v2876_v33, %v3604_v40  ;;  %v2887_v47 = vld [vmem:[%s4546_s8 + $0x2] ss:$8 sm:$0xf]  ;;  %v2894_v52 = vld [vmem:[%s4546_s8 + $0x3] ss:$8 sm:$0xf] }
   0xc   :  { %243 = vperm.xlu1 %3255, %v235_v32   ;;  %v285_v44 = vrot.slane %v276_v42, %v3577_v30  ;;  %v281_v45 = vrot.slane %v276_v42, %v3588_v34  ;;  %v293_v46 = vrot.slane %v276_v42, %v3595_v37  ;;  %v289_v48 = vrot.slane %v276_v42, %v3604_v40  ;;  %v2907_v57 = vld [vmem:[%s4546_s8 + $0x5] ss:$8 sm:$0xf]  ;;  %v2914_v62 = vld [vmem:[%s4546_s8 + $0x6] ss:$8 sm:$0xf] }
   0xd   :  { %2872 = vmatmul.mubr.msk.f32.vlgmr.msra.gmra.mrb[0].mxu0 %vm53_vm0, %v35_v31  ;;  %223 = vperm.xlu0 %3254, %v215_v35   ;;  %v796_v49 = vrot.slane %v2887_v47, %v3577_v30  ;;  %v792_v50 = vrot.slane %v2887_v47, %v3588_v34  ;;  %v804_v51 = vrot.slane %v2887_v47, %v3595_v37  ;;  %v2921_v3 = vld [vmem:[%s4546_s8 + $0x7] ss:$8 sm:$0xf]  ;;  %v2928_v9 = vld [vmem:[%s4546_s8 + $0x20] ss:$8 sm:$0xf] }
   0xe   :  { %2874 = vmatmul.mubr.msk.f32.vlgmr.msra.gmra.mrb[0].mxu1 %vm53_vm0, %v35_v31  ;;  %130 = vmatprep.mubr.f32.mxu0 %v3456_v4  ;;  %v800_v53 = vrot.slane %v2887_v47, %v3604_v40  ;;  %v1060_v54 = vrot.slane %v2894_v52, %v3577_v30  ;;  %v1056_v55 = vrot.slane %v2894_v52, %v3588_v34 }
   0xf   :  { %207 = vmatprep.mubr.f32.mxu1 %v3456_v4  ;;  %v1068_v56 = vrot.slane %v2894_v52, %v3595_v37  ;;  %v1064_v58 = vrot.slane %v2894_v52, %v3604_v40  ;;  %v1505_v59 = vrot.slane %v2907_v57, %v3577_v30  ;;  %v1501_v60 = vrot.slane %v2907_v57, %v3588_v34 }
  0x10   :  { %344 = vrot.lane.b32.xlu1 %v333_v36, %s3458_s2  ;;  %v1513_v61 = vrot.slane %v2907_v57, %v3595_v37  ;;  %v1509_v63 = vrot.slane %v2907_v57, %v3604_v40  ;;  %v1767_v0 = vrot.slane %v2914_v62, %v3577_v30  ;;  %v1763_v1 = vrot.slane %v2914_v62, %v3588_v34 }
  0x11   :  { %2873 = vmatmul.mubr.msk.f32.gmra.mrb[2].mxu0 %vm53_vm0, %v36_v38  ;;  %342 = vrot.lane.b32.xlu0 %v329_v39, %s3458_s2  ;;  %v1775_v2 = vrot.slane %v2914_v62, %v3595_v37  ;;  %v1771_v5 = vrot.slane %v2914_v62, %v3604_v40  ;;  %v2029_v6 = vrot.slane %v2921_v3, %v3577_v30 }
  0x12   :  { %2875 = vmatmul.mubr.msk.f32.gmra.mrb[2].mxu1 %vm53_vm0, %v36_v38  ;;  %489 = vmatprep.mubr.f32.mxu0 %v3456_v4  ;;  %v2025_v7 = vrot.slane %v2921_v3, %v3588_v34  ;;  %v2037_v8 = vrot.slane %v2921_v3, %v3595_v37  ;;  %v2033_v10 = vrot.slane %v2921_v3, %v3604_v40 }
  0x13   :  { %566 = vmatprep.mubr.f32.mxu1 %v3456_v4  ;;  %v2287_v11 = vrot.slane %v2928_v9, %v3588_v34  ;;  %v2291_v12 = vrot.slane %v2928_v9, %v3577_v30  ;;  %v2295_v13 = vrot.slane %v2928_v9, %v3604_v40  ;;  %v2299_v14 = vrot.slane %v2928_v9, %v3595_v37 }
  0x14   :  { %348 = vrot.lane.b32.xlu1 %v341_v41, %s3458_s2 }
  0x15   :  { %346 = vrot.lane.b32.xlu0 %v337_v43, %s3458_s2 }
  0x18   :  { %296 = vrot.lane.b32.xlu1 %v285_v44, %s3459_s1 }
  0x19   :  { %294 = vrot.lane.b32.xlu0 %v281_v45, %s3459_s1 }
  0x1c   :  { %300 = vrot.lane.b32.xlu1 %v293_v46, %s3459_s1 }
  0x1d   :  { %298 = vrot.lane.b32.xlu0 %v289_v48, %s3459_s1 }
  0x20   :  { %807 = vrot.lane.b32.xlu1 %v796_v49, %s3460_s21 }
  0x21   :  { %805 = vrot.lane.b32.xlu0 %v792_v50, %s3460_s21 }
  0x24   :  { %811 = vrot.lane.b32.xlu1 %v804_v51, %s3460_s21 }
  0x25   :  { %809 = vrot.lane.b32.xlu0 %v800_v53, %s3460_s21 }
  0x28   :  { %1071 = vrot.lane.b32.xlu1 %v1060_v54, %s3461_s24 }
  0x29   :  { %1069 = vrot.lane.b32.xlu0 %v1056_v55, %s3461_s24 }
  0x2c   :  { %1075 = vrot.lane.b32.xlu1 %v1068_v56, %s3461_s24 }
  0x2d   :  { %1073 = vrot.lane.b32.xlu0 %v1064_v58, %s3461_s24 }
  0x30   :  { %1516 = vrot.lane.b32.xlu1 %v1505_v59, %s3462_s27 }
  0x31   :  { %1514 = vrot.lane.b32.xlu0 %v1501_v60, %s3462_s27 }
  0x34   :  { %1520 = vrot.lane.b32.xlu1 %v1513_v61, %s3462_s27 }
  0x35   :  { %1518 = vrot.lane.b32.xlu0 %v1509_v63, %s3462_s27 }
  0x38   :  { %1778 = vrot.lane.b32.xlu1 %v1767_v0, %s3463_s30 }
  0x39   :  { %1776 = vrot.lane.b32.xlu0 %v1763_v1, %s3463_s30 }
  0x3c   :  { %1782 = vrot.lane.b32.xlu1 %v1775_v2, %s3463_s30 }
  0x3d   :  { %1780 = vrot.lane.b32.xlu0 %v1771_v5, %s3463_s30 }
  0x40   :  { %2040 = vrot.lane.b32.xlu1 %v2029_v6, %s3464_s12 }
  0x41   :  { %2038 = vrot.lane.b32.xlu0 %v2025_v7, %s3464_s12 }
  0x44   :  { %2044 = vrot.lane.b32.xlu1 %v2037_v8, %s3464_s12 }
  0x45   :  { %2042 = vrot.lane.b32.xlu0 %v2033_v10, %s3464_s12 }
  0x48   :  { %2300 = vrot.lane.b32.xlu1 %v2287_v11, %s3465_s15 }
  0x49   :  { %2302 = vrot.lane.b32.xlu0 %v2291_v12, %s3465_s15 }
  0x4c   :  { %2304 = vrot.lane.b32.xlu1 %v2295_v13, %s3465_s15 }
  0x4d   :  { %2306 = vrot.lane.b32.xlu0 %v2299_v14, %s3465_s15 }
  0x87   :  { %v3693_v16 = vpop.permute.xlu1 %238 }
  0x88   :  { %v219_v15 = vpop.permute.xlu0 %218 }
  0x8b   :  { %v3697_v20 = vpop.permute.xlu1 %243 }
  0x8c   :  { %v3695_v17 = vpop.permute.xlu0 %223 }
  0x8f   :  { %v345_v22 = vpop.permute.xlu1 %344 }
  0x90   :  { %v343_v18 = vpop.permute.xlu0 %342 }
  0x91   :  { %v359_v19 = vmul.f32 0.0, %v343_v18  ;;  %v351_v44 = vsel %vm350_vm1, %v343_v18, %v345_v22 }
  0x93   :  { %v3256_v21 = vpack.i.bf16 %v359_v19, %v359_v19  ;;  %v3700_v23 = vpop.permute.xlu1 %348 }
  0x94   :  { %v347_v25 = vpop.permute.xlu0 %346 }
  0x95   :  { %3257 = vrot.lane.b32.xlu0 %v3256_v21, %s3464_s12  ;;  %v352_v45 = vsel %vm350_vm1, %v345_v22, %v347_v25  ;;  %v353_v46 = vsel %vm350_vm1, %v347_v25, %v3700_v23 }
  0x97   :  { %v297_v24 = vpop.permute.xlu1 %296 }
  0x98   :  { %v295_v27 = vpop.permute.xlu0 %294 }
  0x99   :  { %v3726_v47 = vmul.f32 0.0, %v295_v27  ;;  %v303_v48 = vsel %vm302_vm2, %v295_v27, %v297_v24 }
  0x9b   :  { %v3702_v26 = vpop.permute.xlu1 %300 }
  0x9c   :  { %v299_v29 = vpop.permute.xlu0 %298 }
  0x9d   :  { %v304_v50 = vsel %vm302_vm2, %v297_v24, %v299_v29  ;;  %v3732_v51 = vsel %vm302_vm2, %v299_v29, %v3702_v26 }
  0x9f   :  { %v808_v28 = vpop.permute.xlu1 %807 }
  0xa0   :  { %v3706_v31 = vpop.permute.xlu0 %805 }
  0xa1   :  { %v3736_v52 = vsel %vm813_vm3, %v3706_v31, %v808_v28 }
  0xa3   :  { %v3704_v30 = vpop.permute.xlu1 %811 }
  0xa4   :  { %v810_v33 = vpop.permute.xlu0 %809 }
  0xa5   :  { %v3739_v56 = vsel %vm813_vm3, %v808_v28, %v810_v33  ;;  %v3743_v57 = vsel %vm813_vm3, %v810_v33, %v3704_v30 }
  0xa7   :  { %v1072_v32 = vpop.permute.xlu1 %1071 }
  0xa8   :  { %v3710_v35 = vpop.permute.xlu0 %1069 }
  0xa9   :  { %v3749_v62 = vsel %vm1077_vm4, %v3710_v35, %v1072_v32 }
  0xab   :  { %v3708_v34 = vpop.permute.xlu1 %1075 }
  0xac   :  { %v1074_v37 = vpop.permute.xlu0 %1073 }
  0xad   :  { %v3752_v63 = vsel %vm1077_vm4, %v1072_v32, %v1074_v37  ;;  %v3759_v2 = vsel %vm1077_vm4, %v1074_v37, %v3708_v34 }
  0xaf   :  { %v1517_v36 = vpop.permute.xlu1 %1516 }
  0xb0   :  { %v3714_v39 = vpop.permute.xlu0 %1514 }
  0xb1   :  { %v3763_v3 = vsel %vm1129_vm5, %v3714_v39, %v1517_v36 }
  0xb3   :  { %v3712_v38 = vpop.permute.xlu1 %1520 }
  0xb4   :  { %v3716_v41 = vpop.permute.xlu0 %1518 }
  0xb5   :  { %v3775_v9 = vsel %vm1129_vm5, %v1517_v36, %v3716_v41 }
  0xb7   :  { %v1779_v40 = vpop.permute.xlu1 %1778 }
  0xb8   :  { %v3720_v43 = vpop.permute.xlu0 %1776 }
  0xbb   :  { %v3718_v42 = vpop.permute.xlu1 %1782 }
  0xbc   :  { %v3765_v5 = vpop.permute.xlu0 %1780 }
  0xbf   :  { %v3745_v58 = vpop.permute.xlu1 %2040 }
  0xc3   :  { %v3796_v28 = vpop.permute.xlu1 %2044 }
  0xe0   :  { %v126_v49 = vpop.f32.mrb[0].mxu0 }
  0xe1   :  { %v226_v53 = vmul.f32 %v219_v15, %v126_v49  ;;  %v203_v54 = vpop.f32.mrb[0].mxu1  ;;  %v128_v55 = vpop.f32.mrb[1].mxu0 }
  0xe2   :  { %v228_v59 = vmul.f32 %v219_v15, %v203_v54  ;;  %v227_v60 = vmul.f32 %v219_v15, %v128_v55  ;;  %v205_v61 = vpop.f32.mrb[1].mxu1  ;;  %v3816_v54 = vpop.permute.xlu0 %2038 }
  0xe3   :  { %v3755_v0 = vadd.f32 %v3693_v16, %v226_v53  ;;  %v229_v1 = vmul.f32 %v219_v15, %v205_v61  ;;  %v3784_v15 = vsel %vm865_vm6, %v3720_v43, %v1779_v40 }
  0xe4   :  { %v3768_v6 = vadd.f32 %v3693_v16, %v228_v59  ;;  %v3771_v7 = vadd.f32 %v3693_v16, %v227_v60  ;;  %v132_v8 = vpop.f32.mrb[2].mxu0 }
  0xe5   :  { %v3778_v10 = vadd.f32 %v3693_v16, %v229_v1  ;;  %v230_v11 = vmul.f32 %v3695_v17, %v132_v8  ;;  %v209_v12 = vpop.f32.mrb[2].mxu1  ;;  %v134_v13 = vpop.f32.mrb[3].mxu0  ;;  %v360_v14 = vmul.f32 %v351_v44, %v3755_v0  ;;  %v312_v27 = vmul.f32 %v303_v48, %v3755_v0 }
  0xe6   :  { %v232_v18 = vmul.f32 %v3695_v17, %v209_v12  ;;  %v231_v19 = vmul.f32 %v3695_v17, %v134_v13  ;;  %v211_v21 = vpop.f32.mrb[3].mxu1  ;;  %v362_v22 = vmul.f32 %v353_v46, %v3768_v6  ;;  %v361_v33 = vmul.f32 %v352_v45, %v3771_v7 }
  0xe7   :  { %v3790_v16 = vadd.f32 %v3697_v20, %v230_v11  ;;  %v233_v24 = vmul.f32 %v3695_v17, %v211_v21  ;;  %v363_v25 = vmul.f32 %v3700_v23, %v3778_v10  ;;  %v314_v36 = vmul.f32 %v3732_v51, %v3768_v6 }
  0xe8   :  { %v3799_v29 = vadd.f32 %v3697_v20, %v232_v18  ;;  %v3802_v32 = vadd.f32 %v3697_v20, %v231_v19  ;;  %v3809_v17 = vsel %vm865_vm6, %v1779_v40, %v3765_v5  ;;  %v315_v53 = vmul.f32 %v3702_v26, %v3778_v10 }
  0xe9   :  { %v3812_v37 = vadd.f32 %v3697_v20, %v233_v24  ;;  %v3266_v49 = vpack.i.bf16 %v363_v25, %v362_v22  ;;  %v3261_v55 = vpack.i.bf16 %v361_v33, %v360_v14  ;;  %v313_v59 = vmul.f32 %v304_v50, %v3771_v7  ;;  %v3844_v14 = vpop.permute.xlu1 %2300 }
  0xea   :  { %v367_v60 = vmul.f32 %v353_v46, %v3799_v29  ;;  %v365_v61 = vmul.f32 %v351_v44, %v3790_v16  ;;  %v3286_v40 = vpack.i.bf16 %v315_v53, %v314_v36  ;;  %v366_v1 = vmul.f32 %v352_v45, %v3802_v32 }
  0xeb   :  { %3267 = vrot.lane.b32.xlu1 %v3266_v49, %s3464_s12  ;;  %v368_v20 = vmul.f32 %v3700_v23, %v3812_v37  ;;  %v317_v8 = vmul.f32 %v303_v48, %v3790_v16  ;;  %3262 = vrot.lane.b32.xlu0 %v3261_v55, %s3464_s12  ;;  %v3271_v11 = vpack.i.bf16 %v313_v59, %v312_v27  ;;  %v3871_v27 = vpop.permute.xlu0 %2042 }
  0xec   :  { %v318_v12 = vmul.f32 %v304_v50, %v3802_v32  ;;  %v3830_v44 = vmul.f32 %v3743_v57, %v3768_v6  ;;  %v3834_v46 = vmul.f32 %v3704_v30, %v3778_v10  ;;  %v3276_v23 = vpack.i.bf16 %v366_v1, %v365_v61 }
  0xed   :  { %v3291_v13 = vpack.i.bf16 %v368_v20, %v367_v60  ;;  %v3838_v45 = vmul.f32 %v3736_v52, %v3755_v0  ;;  %v3842_v48 = vmul.f32 %v3739_v56, %v3771_v7  ;;  %v3850_v19 = vmul.f32 %v3732_v51, %v3799_v29  ;;  %v3931_v20 = vpop.permute.xlu1 %2304 }
  0xee   :  { %v3296_v50 = vpack.i.bf16 %v318_v12, %v317_v8  ;;  %v3311_v18 = vpack.i.bf16 %v3834_v46, %v3830_v44  ;;  %v3854_v21 = vmul.f32 %v3702_v26, %v3812_v37  ;;  %v3861_v24 = vmul.f32 %v3736_v52, %v3790_v16 }
  0xef   :  { %3272 = vrot.lane.b32.xlu1 %v3271_v11, %s3465_s15  ;;  %v3301_v22 = vpack.i.bf16 %v3842_v48, %v3838_v45  ;;  %v3865_v25 = vmul.f32 %v3739_v56, %v3802_v32  ;;  %v3869_v51 = vmul.f32 %v3743_v57, %v3799_v29  ;;  %3287 = vrot.lane.b32.xlu0 %v3286_v40, %s3465_s15 }
  0xf0   :  { %v3316_v26 = vpack.i.bf16 %v3854_v21, %v3850_v19  ;;  %v3878_v33 = vmul.f32 %v3704_v30, %v3812_v37  ;;  %v3882_v52 = vmul.f32 %v3749_v62, %v3755_v0  ;;  %v3886_v56 = vmul.f32 %v3752_v63, %v3771_v7 }
  0xf1   :  { %v3321_v57 = vpack.i.bf16 %v3865_v25, %v3861_v24  ;;  %v3892_v36 = vmul.f32 %v3749_v62, %v3790_v16  ;;  %v3896_v49 = vmul.f32 %v3752_v63, %v3802_v32  ;;  %v3900_v30 = vmul.f32 %v3759_v2, %v3768_v6 }
  0xf2   :  { %v3336_v53 = vpack.i.bf16 %v3878_v33, %v3869_v51  ;;  %v3326_v55 = vpack.i.bf16 %v3886_v56, %v3882_v52  ;;  %v3908_v59 = vmul.f32 %v3708_v34, %v3778_v10  ;;  %v3912_v62 = vmul.f32 %v3759_v2, %v3799_v29 }
  0xf3   :  { %3277 = vrot.lane.b32.xlu1 %v3276_v23, %s3464_s12  ;;  %v3341_v63 = vpack.i.bf16 %v3896_v49, %v3892_v36  ;;  %v3919_v60 = vmul.f32 %v3708_v34, %v3812_v37  ;;  %v3923_v61 = vmul.f32 %v3763_v3, %v3771_v7  ;;  %v3927_v40 = vmul.f32 %v3775_v9, %v3768_v6 }
  0xf4   :  { %v3281_v2 = vpack.i.bf16 %v3726_v47, %v3726_v47  ;;  %3292 = vrot.lane.b32.xlu0 %v3291_v13, %s3464_s12  ;;  %v3346_v1 = vpack.i.bf16 %v3908_v59, %v3900_v30  ;;  %v3938_v34 = vmul.f32 %v3714_v39, %v3755_v0  ;;  %v3942_v8 = vmul.f32 %v3714_v39, %v3790_v16  ;;  %v2303_v39 = vpop.permute.xlu0 %2302 }
  0xf5   :  { %v3361_v11 = vpack.i.bf16 %v3919_v60, %v3912_v62  ;;  %v3351_v47 = vpack.i.bf16 %v3927_v40, %v3923_v61  ;;  %v3950_v12 = vmul.f32 %v3784_v15, %v3771_v7  ;;  %v3954_v44 = vmul.f32 %v3809_v17, %v3768_v6 }
  0xf6   :  { %v2046_v46 = vsel %vm402_vm7, %v3816_v54, %v3745_v58  ;;  %v3356_v13 = vpack.i.bf16 %v3942_v8, %v3938_v34  ;;  %v3963_v23 = vmul.f32 %v3763_v3, %v3802_v32  ;;  %v2047_v45 = vsel %vm402_vm7, %v3745_v58, %v3871_v27 }
  0xf7   :  { %v2309_v48 = vsel %vm609_vm8, %v2303_v39, %v3931_v20  ;;  %3282 = vrot.lane.b32.xlu1 %v3281_v2, %s3465_s15  ;;  %v3371_v30 = vpack.i.bf16 %v3954_v44, %v3950_v12  ;;  %v3975_v59 = vmul.f32 %v3775_v9, %v3799_v29  ;;  %v3980_v3 = vmul.f32 %v3720_v43, %v3755_v0 }
  0xf8   :  { %3297 = vrot.lane.b32.xlu0 %v3296_v50, %s3465_s15  ;;  %v3984_v58 = vmul.f32 %v3720_v43, %v3790_v16  ;;  %v3988_v61 = vmul.f32 %v3784_v15, %v3802_v32  ;;  %v3992_v40 = vmul.f32 %v3809_v17, %v3799_v29  ;;  %v822_v9 = vmul.f32 0.0, %v3706_v31 }
  0xf9   :  { %v3376_v50 = vpack.i.bf16 %v3975_v59, %v3963_v23  ;;  %v3998_v2 = vmul.f32 %v2046_v46, %v3771_v7  ;;  %v2308_v43 = vsel %vm609_vm8, %v3844_v14, %v2303_v39  ;;  %v2056_v17 = vmul.f32 %v2047_v45, %v3768_v6 }
  0xfa   :  { %v3381_v34 = vpack.i.bf16 %v3984_v58, %v3980_v3  ;;  %v3396_v15 = vpack.i.bf16 %v3992_v40, %v3988_v61  ;;  %v4008_v8 = vmul.f32 %v2309_v48, %v3768_v6  ;;  %v2054_v31 = vmul.f32 %v3816_v54, %v3755_v0 }
  0xfb   :  { %3312 = vrot.lane.b32.xlu1 %v3311_v18, %s3463_s30  ;;  %v2059_v12 = vmul.f32 %v3816_v54, %v3790_v16  ;;  %v4016_v44 = vmul.f32 %v2046_v46, %v3802_v32  ;;  %v3401_v39 = vpack.i.bf16 %v2056_v17, %v3998_v2  ;;  %v2061_v23 = vmul.f32 %v2047_v45, %v3799_v29 }
  0xfc   :  { %3302 = vrot.lane.b32.xlu0 %v3301_v22, %s3463_s30  ;;  %v2317_v3 = vmul.f32 %v2308_v43, %v3771_v7  ;;  %v2322_v18 = vmul.f32 %v2308_v43, %v3802_v32  ;;  %v2323_v58 = vmul.f32 %v2309_v48, %v3799_v29  ;;  %v3306_v61 = vpack.i.bf16 %v822_v9, %v822_v9 }
  0xfd   :  { %v3406_v59 = vpack.i.bf16 %v2059_v12, %v2054_v31  ;;  %v3421_v40 = vpack.i.bf16 %v2061_v23, %v4016_v44  ;;  %v2316_v54 = vmul.f32 %v3844_v14, %v3755_v0  ;;  %v2321_v22 = vmul.f32 %v3844_v14, %v3790_v16 }
  0xfe   :  { %v3426_v46 = vpack.i.bf16 %v4008_v8, %v2317_v3  ;;  %v3441_v45 = vpack.i.bf16 %v2323_v58, %v2322_v18  ;;  %v3072_v48 = vpack.c.bf16 %v3802_v32, %v3771_v7  ;;  %v3074_v2 = vpack.c.bf16 %v3790_v16, %v3755_v0  ;;  %v2901_v16 = vld [vmem:[%s4549_s4 + $0x40] sm:$0xff] }
  0xff   :  { %3317 = vrot.lane.b32.xlu1 %v3316_v26, %s3465_s15  ;;  %v3431_v9 = vpack.i.bf16 %v2321_v22, %v2316_v54  ;;  %v3076_v14 = vpack.c.bf16 %v3812_v37, %v3778_v10  ;;  %v3078_v43 = vpack.c.bf16 %v3799_v29, %v3768_v6  ;;  %v1086_v19 = vmul.f32 0.0, %v3710_v35 }
 0x100   :  { %3307 = vrot.lane.b32.xlu0 %v3306_v61, %s3463_s30  ;;  %v1524_v24 = vsel %vm1129_vm5, %v3716_v41, %v3712_v38  ;;  %v1534_v35 = vmul.f32 0.0, %v3712_v38  ;;  %v1786_v51 = vsel %vm865_vm6, %v3765_v5, %v3718_v42  ;;  %v1796_v26 = vmul.f32 0.0, %v3718_v42 }
 0x101   :  { %v3331_v21 = vpack.i.bf16 %v1086_v19, %v1086_v19  ;;  %v1533_v25 = vmul.f32 %v1524_v24, %v3778_v10  ;;  %v1795_v33 = vmul.f32 %v1786_v51, %v3778_v10  ;;  %v1538_v52 = vmul.f32 %v1524_v24, %v3812_v37 }
 0x102   :  { %v2048_v5 = vsel %vm402_vm7, %v3871_v27, %v3796_v28  ;;  %v2058_v42 = vmul.f32 0.0, %v3796_v28  ;;  %v1800_v49 = vmul.f32 %v1786_v51, %v3812_v37 }
 0x103   :  { %3322 = vrot.lane.b32.xlu1 %v3321_v57, %s3463_s30  ;;  %v3366_v41 = vpack.i.bf16 %v1534_v35, %v1533_v25  ;;  %v3386_v38 = vpack.i.bf16 %v1796_v26, %v1795_v33  ;;  %v3391_v56 = vpack.i.bf16 %v1534_v35, %v1538_v52  ;;  %v2057_v57 = vmul.f32 %v2048_v5, %v3778_v10 }
 0x104   :  { %3337 = vrot.lane.b32.xlu0 %v3336_v53, %s3463_s30  ;;  %v3416_v27 = vpack.i.bf16 %v1796_v26, %v1800_v49  ;;  %v2062_v53 = vmul.f32 %v2048_v5, %v3812_v37 }
 0x105   :  { %v3411_v36 = vpack.i.bf16 %v2058_v42, %v2057_v57 }
 0x106   :  { %v3436_v28 = vpack.i.bf16 %v2058_v42, %v2062_v53  ;;  %v2877_v53 = vld [vmem:[%s4549_s4 + $0x10] sm:$0xff] }
 0x107   :  { %3327 = vrot.lane.b32.xlu1 %v3326_v55, %s3462_s27  ;;  %v2307_v55 = vpop.permute.xlu0 %2306 }
 0x108   :  { %3342 = vrot.lane.b32.xlu0 %v3341_v63, %s3462_s27  ;;  %v2310_v62 = vsel %vm609_vm8, %v3931_v20, %v2307_v55  ;;  %v2320_v60 = vmul.f32 0.0, %v2307_v55  ;;  %v2607_v20 = vld [vmem:[%s4547_s5] sm:$0xff] }
 0x109   :  { %v2319_v63 = vmul.f32 %v2310_v62, %v3778_v10 }
 0x10b   :  { %3332 = vrot.lane.b32.xlu1 %v3331_v21, %s3462_s27 }
 0x10c   :  { %3347 = vrot.lane.b32.xlu0 %v3346_v1, %s3462_s27  ;;  %v2324_v1 = vmul.f32 %v2310_v62, %v3812_v37 }
 0x10f   :  { %3362 = vrot.lane.b32.xlu1 %v3361_v11, %s3462_s27  ;;  %v3446_v11 = vpack.i.bf16 %v2320_v60, %v2319_v63 }
 0x110   :  { %3352 = vrot.lane.b32.xlu0 %v3351_v47, %s3461_s24  ;;  %v3451_v47 = vpack.i.bf16 %v2320_v60, %v2324_v1 }
 0x113   :  { %3367 = vrot.lane.b32.xlu1 %v3366_v41, %s3461_s24 }
 0x114   :  { %3357 = vrot.lane.b32.xlu0 %v3356_v13, %s3461_s24  ;;  %v2608_v13 = vld [vmem:[%s4547_s5 + $0x8] sm:$0xff] }
 0x117   :  { %3372 = vrot.lane.b32.xlu1 %v3371_v30, %s3460_s21  ;;  %v2771_v30 = vld [vmem:[%s4548_s7] sm:$0xff] }
 0x118   :  { %3387 = vrot.lane.b32.xlu0 %v3386_v38, %s3460_s21 }
 0x11b   :  { %3377 = vrot.lane.b32.xlu1 %v3376_v50, %s3461_s24  ;;  %v2772_v50 = vld [vmem:[%s4548_s7 + $0x8] sm:$0x3] }
 0x11c   :  { %3392 = vrot.lane.b32.xlu0 %v3391_v56, %s3461_s24 }
 0x11f   :  { %3382 = vrot.lane.b32.xlu1 %v3381_v34, %s3460_s21  ;;  %v3258_v34 = vpop.permute.xlu0 %3257 }
 0x120   :  { %3397 = vrot.lane.b32.xlu0 %v3396_v15, %s3460_s21  ;;  %v3259_v3 = vunpack.i.l.bf16 %v3258_v34 }
 0x123   :  { %3412 = vrot.lane.b32.xlu1 %v3411_v36, %s3458_s2 }
 0x124   :  { %3402 = vrot.lane.b32.xlu0 %v3401_v39, %s3458_s2 }
 0x127   :  { %3417 = vrot.lane.b32.xlu1 %v3416_v27, %s3460_s21 }
 0x128   :  { %3407 = vrot.lane.b32.xlu0 %v3406_v59, %s3458_s2  ;;  %v3260_v59 = vunpack.i.h.bf16 %v3258_v34 }
 0x12b   :  { %3422 = vrot.lane.b32.xlu1 %v3421_v40, %s3458_s2 }
 0x12c   :  { %3437 = vrot.lane.b32.xlu0 %v3436_v28, %s3458_s2 }
 0x12f   :  { %3427 = vrot.lane.b32.xlu1 %v3426_v46, %s3459_s1 }
 0x130   :  { %3442 = vrot.lane.b32.xlu0 %v3441_v45, %s3459_s1 }
 0x133   :  { %3432 = vrot.lane.b32.xlu1 %v3431_v9, %s3459_s1 }
 0x134   :  { %3447 = vrot.lane.b32.xlu0 %v3446_v11, %s3459_s1 }
 0x137   :  { %3452 = vrot.lane.b32.xlu1 %v3451_v47, %s3459_s1 }
 0x138   :  { %2611 = vperm.xlu0 %3254, %v2607_v20  }
 0x13b   :  { %2616 = vperm.xlu1 %3255, %v2608_v13   ;;  %v2878_v13 = vld [vmem:[%s4549_s4 + $0x18] sm:$0xff] }
 0x13c   :  { %2775 = vperm.xlu0 %3254, %v2771_v30  }
 0x13f   :  { %2780 = vperm.xlu1 %3255, %v2772_v50  }
 0x15d   :  { %v3268_v15 = vpop.permute.xlu1 %3267  ;;  %v3263_v17 = vpop.permute.xlu0 %3262 }
 0x15e   :  { %v3270_v31 = vunpack.i.h.bf16 %v3268_v15  ;;  %v3269_v12 = vunpack.i.l.bf16 %v3268_v15  ;;  %v3265_v44 = vunpack.i.h.bf16 %v3263_v17  ;;  %v3264_v23 = vunpack.i.l.bf16 %v3263_v17 }
 0x160   :  { %v405_v58 = vsel %vm402_vm7, %v3265_v44, %v3269_v12  ;;  %v406_v22 = vsel %vm402_vm7, %v3269_v12, %v3270_v31  ;;  %v403_v46 = vsel %vm402_vm7, %v3259_v3, %v3264_v23  ;;  %v404_v19 = vsel %vm402_vm7, %v3264_v23, %v3265_v44 }
 0x161   :  { %v4120_v8 = vpop.permute.xlu1 %3272  ;;  %v4122_v39 = vpop.permute.xlu0 %3287 }
 0x162   :  { %v3275_v21 = vunpack.i.h.bf16 %v4120_v8  ;;  %v3274_v24 = vunpack.i.l.bf16 %v4120_v8  ;;  %v3289_v47 = vunpack.i.l.bf16 %v4122_v39  ;;  %v3290_v20 = vunpack.i.h.bf16 %v4122_v39 }
 0x164   :  { %v611_v62 = vsel %vm609_vm8, %v3274_v24, %v3275_v21  ;;  %v612_v31 = vsel %vm609_vm8, %v3275_v21, %v3289_v47  ;;  %v613_v3 = vsel %vm609_vm8, %v3289_v47, %v3290_v20 }
 0x165   :  { %v3278_v18 = vpop.permute.xlu1 %3277 }
 0x166   :  { %v3293_v61 = vpop.permute.xlu0 %3292  ;;  %v3280_v40 = vunpack.i.h.bf16 %v3278_v18  ;;  %v3279_v54 = vunpack.i.l.bf16 %v3278_v18 }
 0x167   :  { %v3295_v45 = vunpack.i.h.bf16 %v3293_v61  ;;  %v3294_v9 = vunpack.i.l.bf16 %v3293_v61 }
 0x168   :  { %v407_v35 = vsel %vm402_vm7, %v3260_v59, %v3279_v54  ;;  %v408_v25 = vsel %vm402_vm7, %v3279_v54, %v3280_v40  ;;  %v321_v59 = vld [vmem:[%s4549_s4] sm:$0xff] }
 0x169   :  { %v409_v51 = vsel %vm402_vm7, %v3280_v40, %v3294_v9  ;;  %v3042_v41 = vpack.c.bf16 %v407_v35, %v403_v46  ;;  %v3283_v26 = vpop.permute.xlu1 %3282  ;;  %v3040_v33 = vpack.c.bf16 %v408_v25, %v404_v19  ;;  %v410_v38 = vsel %vm402_vm7, %v3294_v9, %v3295_v45 }
 0x16a   :  { %v3046_v52 = vpack.c.bf16 %v409_v51, %v405_v58  ;;  %v3285_v5 = vunpack.i.h.bf16 %v3283_v26  ;;  %v3284_v56 = vunpack.i.l.bf16 %v3283_v26  ;;  %v3298_v42 = vpop.permute.xlu0 %3297  ;;  %v3044_v57 = vpack.c.bf16 %v410_v38, %v406_v22 }
 0x16b   :  { %v3300_v36 = vunpack.i.h.bf16 %v3298_v42  ;;  %v3299_v49 = vunpack.i.l.bf16 %v3298_v42  ;;  %3041 = vmatprep.subr.bf16.mxu0 %v3040_v33 }
 0x16c   :  { %v610_v27 = vsel %vm609_vm8, %v3284_v56, %v3274_v24  ;;  %3045 = vmatprep.subr.bf16.mxu1 %v3044_v57  ;;  %3043 = vmatpush1.bf16.msra.mxu0 %v3042_v41  ;;  %v322_v41 = vld [vmem:[%s4549_s4 + $0x8] sm:$0xff] }
 0x16d   :  { %v614_v55 = vsel %vm609_vm8, %v3285_v5, %v3299_v49  ;;  %3047 = vmatpush1.bf16.msra.mxu1 %v3046_v52  ;;  %v3313_v28 = vpop.permute.xlu1 %3312  ;;  %v615_v63 = vsel %vm609_vm8, %v3299_v49, %v3300_v36 }
 0x16e   :  { %v3050_v60 = vpack.c.bf16 %v614_v55, %v610_v27  ;;  %v3303_v1 = vpop.permute.xlu0 %3302  ;;  %v3048_v11 = vpack.c.bf16 %v615_v63, %v611_v62  ;;  %v3315_v50 = vunpack.i.h.bf16 %v3313_v28  ;;  %v3314_v34 = vunpack.i.l.bf16 %v3313_v28  ;;  %v2888_v63 = vld [vmem:[%s4549_s4 + $0x20] sm:$0xff] }
 0x16f   :  { %2879 = vmatmul.mubr.msk.f32.vlgmr.msra.gmra.mrb[4].mxu0 %vm402_vm7, %v2877_v53  ;;  %v3305_v12 = vunpack.i.h.bf16 %v3303_v1  ;;  %v3304_v44 = vunpack.i.l.bf16 %v3303_v1 }
 0x170   :  { %3049 = vmatprep.subr.bf16.mxu0 %v3048_v11  ;;  %495 = vmatprep.mubr.f32.mxu0 %v3456_v4  ;;  %v869_v9 = vsel %vm865_vm6, %v3314_v34, %v3315_v50 }
 0x171   :  { %3051 = vmatpush1.bf16.msra.mxu0 %v3050_v60  ;;  %v3318_v30 = vpop.permute.xlu1 %3317  ;;  %2881 = vmatmul.mubr.msk.f32.vlgmr.msra.gmra.mrb[4].mxu1 %vm402_vm7, %v2877_v53  ;;  %v868_v19 = vsel %vm865_vm6, %v3305_v12, %v3314_v34  ;;  %v867_v35 = vsel %vm865_vm6, %v3304_v44, %v3305_v12 }
 0x172   :  { %v3320_v15 = vunpack.i.h.bf16 %v3318_v30  ;;  %v3319_v17 = vunpack.i.l.bf16 %v3318_v30  ;;  %v3308_v8 = vpop.permute.xlu0 %3307  ;;  %572 = vmatprep.mubr.f32.mxu1 %v3456_v4 }
 0x173   :  { %2880 = vmatmul.mubr.msk.f32.gmra.mrb[6].mxu0 %vm402_vm7, %v2878_v13  ;;  %v3309_v23 = vunpack.i.l.bf16 %v3308_v8  ;;  %v3310_v54 = vunpack.i.h.bf16 %v3308_v8  ;;  %v2889_v8 = vld [vmem:[%s4549_s4 + $0x28] sm:$0xff] }
 0x174   :  { %v616_v39 = vsel %vm609_vm8, %v3300_v36, %v3319_v17  ;;  %696 = vmatprep.mubr.f32.mxu0 %v3456_v4  ;;  %v617_v18 = vsel %vm609_vm8, %v3319_v17, %v3320_v15 }
 0x175   :  { %v3054_v58 = vpack.c.bf16 %v616_v39, %v612_v31  ;;  %v3323_v61 = vpop.permute.xlu1 %3322  ;;  %2882 = vmatmul.mubr.msk.f32.gmra.mrb[6].mxu1 %vm402_vm7, %v2878_v13  ;;  %v3052_v40 = vpack.c.bf16 %v617_v18, %v613_v3  ;;  %v866_v25 = vsel %vm865_vm6, %v3309_v23, %v3304_v44 }
 0x176   :  { %v3325_v22 = vunpack.i.h.bf16 %v3323_v61  ;;  %v3324_v46 = vunpack.i.l.bf16 %v3323_v61  ;;  %v3338_v45 = vpop.permute.xlu0 %3337  ;;  %773 = vmatprep.mubr.f32.mxu1 %v3456_v4  ;;  %v2895_v61 = vld [vmem:[%s4549_s4 + $0x30] sm:$0xff] }
 0x177   :  { %v3340_v21 = vunpack.i.h.bf16 %v3338_v45  ;;  %v3339_v24 = vunpack.i.l.bf16 %v3338_v45  ;;  %2883 = vmatmul.mubr.msk.f32.vlgmr.msra.gmra.mrb[4].mxu0 %vm402_vm7, %v321_v59  ;;  %3053 = vmatprep.subr.bf16.mxu1 %v3052_v40 }
 0x178   :  { %v870_v51 = vsel %vm865_vm6, %v3310_v54, %v3324_v46  ;;  %3055 = vmatpush1.bf16.msra.mxu1 %v3054_v58  ;;  %702 = vmatprep.mubr.f32.mxu0 %v3456_v4  ;;  %v871_v26 = vsel %vm865_vm6, %v3324_v46, %v3325_v22 }
 0x179   :  { %v3058_v33 = vpack.c.bf16 %v870_v51, %v866_v25  ;;  %v872_v38 = vsel %vm865_vm6, %v3325_v22, %v3339_v24  ;;  %v3328_v52 = vpop.permute.xlu1 %3327  ;;  %v3056_v5 = vpack.c.bf16 %v871_v26, %v867_v35  ;;  %v873_v56 = vsel %vm865_vm6, %v3339_v24, %v3340_v21  ;;  %v2896_v22 = vld [vmem:[%s4549_s4 + $0x38] sm:$0xff] }
 0x17a   :  { %v3062_v42 = vpack.c.bf16 %v872_v38, %v868_v19  ;;  %v3330_v57 = vunpack.i.h.bf16 %v3328_v52  ;;  %v3329_v36 = vunpack.i.l.bf16 %v3328_v52  ;;  %v3343_v49 = vpop.permute.xlu0 %3342  ;;  %v3060_v27 = vpack.c.bf16 %v873_v56, %v869_v9 }
 0x17b   :  { %v3345_v53 = vunpack.i.h.bf16 %v3343_v49  ;;  %v3344_v55 = vunpack.i.l.bf16 %v3343_v49  ;;  %2884 = vmatmul.mubr.msk.f32.gmra.mrb[6].mxu0 %vm402_vm7, %v322_v41  ;;  %2885 = vmatmul.mubr.msk.f32.vlgmr.msra.gmra.mrb[4].mxu1 %vm402_vm7, %v321_v59 }
 0x17c   :  { %3057 = vmatprep.subr.bf16.mxu0 %v3056_v5  ;;  %3061 = vmatprep.subr.bf16.mxu1 %v3060_v27  ;;  %v1131_v28 = vsel %vm1129_vm5, %v3329_v36, %v3330_v57  ;;  %v2902_v5 = vld [vmem:[%s4549_s4 + $0x48] sm:$0xff] }
 0x17d   :  { %3059 = vmatpush1.bf16.msra.mxu0 %v3058_v33  ;;  %3063 = vmatpush1.bf16.msra.mxu1 %v3062_v42  ;;  %v3333_v62 = vpop.permute.xlu1 %3332  ;;  %v1135_v60 = vsel %vm1129_vm5, %v3344_v55, %v3345_v53 }
 0x17e   :  { %v3335_v1 = vunpack.i.h.bf16 %v3333_v62  ;;  %v3334_v11 = vunpack.i.l.bf16 %v3333_v62  ;;  %v3348_v47 = vpop.permute.xlu0 %3347  ;;  %779 = vmatprep.mubr.f32.mxu1 %v3456_v4  ;;  %952 = vmatprep.mubr.f32.mxu0 %v3456_v4  ;;  %v3064_v20 = vpack.c.bf16 %v1135_v60, %v1131_v28 }
 0x17f   :  { %v3349_v13 = vunpack.i.l.bf16 %v3348_v47  ;;  %2886 = vmatmul.mubr.msk.f32.gmra.mrb[6].mxu1 %vm402_vm7, %v322_v41  ;;  %v3350_v34 = vunpack.i.h.bf16 %v3348_v47 }
 0x180   :  { %v1130_v30 = vsel %vm1129_vm5, %v3334_v11, %v3329_v36  ;;  %v1134_v50 = vsel %vm1129_vm5, %v3335_v1, %v3344_v55  ;;  %2890 = vmatmul.mubr.msk.f32.vlgmr.msra.gmra.mrb[4].mxu0 %vm402_vm7, %v2888_v63  ;;  %3065 = vmatprep.subr.bf16.mxu0 %v3064_v20  ;;  %v2908_v1 = vld [vmem:[%s4549_s4 + $0x50] sm:$0xff] }
 0x181   :  { %v3066_v15 = vpack.c.bf16 %v1134_v50, %v1130_v30  ;;  %v3363_v17 = vpop.permute.xlu1 %3362  ;;  %958 = vmatprep.mubr.f32.mxu0 %v3456_v4  ;;  %1029 = vmatprep.mubr.f32.mxu1 %v3456_v4  ;;  %v1132_v39 = vsel %vm1129_vm5, %v3330_v57, %v3349_v13  ;;  %v1133_v59 = vsel %vm1129_vm5, %v3349_v13, %v3350_v34 }
 0x182   :  { %v3365_v31 = vunpack.i.h.bf16 %v3363_v17  ;;  %v3364_v12 = vunpack.i.l.bf16 %v3363_v17  ;;  %v3353_v44 = vpop.permute.xlu0 %3352  ;;  %v2909_v17 = vld [vmem:[%s4549_s4 + $0x58] sm:$0xff] }
 0x183   :  { %2892 = vmatmul.mubr.msk.f32.vlgmr.msra.gmra.mrb[4].mxu1 %vm402_vm7, %v2888_v63  ;;  %3067 = vmatpush1.bf16.msra.mxu0 %v3066_v15  ;;  %v3355_v7 = vunpack.i.h.bf16 %v3353_v44  ;;  %v3354_v32 = vunpack.i.l.bf16 %v3353_v44 }
 0x184   :  { %v1136_v23 = vsel %vm1129_vm5, %v3345_v53, %v3364_v12  ;;  %2891 = vmatmul.mubr.msk.f32.gmra.mrb[6].mxu0 %vm402_vm7, %v2889_v8  ;;  %3073 = vmatprep.subr.bf16.mxu0 %v3072_v48  ;;  %v1137_v3 = vsel %vm1129_vm5, %v3364_v12, %v3365_v31 }
 0x185   :  { %v3070_v18 = vpack.c.bf16 %v1136_v23, %v1132_v39  ;;  %v3368_v58 = vpop.permute.xlu1 %3367  ;;  %1035 = vmatprep.mubr.f32.mxu1 %v3456_v4  ;;  %1216 = vmatprep.mubr.f32.mxu0 %v3456_v4  ;;  %v3068_v40 = vpack.c.bf16 %v1137_v3, %v1133_v59  ;;  %v1574_v37 = vsel %vm1077_vm4, %v3354_v32, %v3355_v7 }
 0x186   :  { %v3358_v54 = vpop.permute.xlu0 %3357  ;;  %v3369_v46 = vunpack.i.l.bf16 %v3368_v58  ;;  %v3370_v9 = vunpack.i.h.bf16 %v3368_v58 }
 0x187   :  { %2893 = vmatmul.mubr.msk.f32.gmra.mrb[6].mxu1 %vm402_vm7, %v2889_v8  ;;  %3069 = vmatprep.subr.bf16.mxu1 %v3068_v40  ;;  %v3359_v0 = vunpack.i.l.bf16 %v3358_v54 }
 0x188   :  { %2897 = vmatmul.mubr.msk.f32.vlgmr.msra.gmra.mrb[4].mxu0 %vm402_vm7, %v2895_v61  ;;  %3071 = vmatpush1.bf16.msra.mxu1 %v3070_v18  ;;  %v1576_v35 = vsel %vm1077_vm4, %v3369_v46, %v3370_v9 }
 0x189   :  { %3075 = vmatpush1.bf16.msra.mxu0 %v3074_v2  ;;  %v4211_v48 = vpop.permute.xlu1 %3372  ;;  %3077 = vmatprep.subr.bf16.mxu1 %v3076_v14  ;;  %v1575_v2 = vsel %vm1077_vm4, %v3355_v7, %v3369_v46  ;;  %v3360_v14 = vunpack.i.h.bf16 %v3358_v54  ;;  %v1573_v6 = vsel %vm1077_vm4, %v3359_v0, %v3354_v32  ;;  %v2915_v32 = vld [vmem:[%s4549_s4 + $0x60] sm:$0xff] }
 0x18a   :  { %v4219_v45 = vpop.permute.xlu0 %3387  ;;  %1222 = vmatprep.mubr.f32.mxu0 %v3456_v4  ;;  %1293 = vmatprep.mubr.f32.mxu1 %v3456_v4  ;;  %v3375_v25 = vunpack.i.h.bf16 %v4211_v48  ;;  %v3374_v51 = vunpack.i.l.bf16 %v4211_v48 }
 0x18b   :  { %2899 = vmatmul.mubr.msk.f32.vlgmr.msra.gmra.mrb[4].mxu1 %vm402_vm7, %v2895_v61  ;;  %v3389_v50 = vunpack.i.l.bf16 %v4219_v45  ;;  %v3390_v34 = vunpack.i.h.bf16 %v4219_v45 }
 0x18c   :  { %2898 = vmatmul.mubr.msk.f32.gmra.mrb[6].mxu0 %vm402_vm7, %v2896_v22  ;;  %3079 = vmatpush1.bf16.msra.mxu1 %v3078_v43  ;;  %v1836_v11 = vsel %vm813_vm3, %v3374_v51, %v3375_v25 }
 0x18d   :  { %v3378_v10 = vpop.permute.xlu1 %3377  ;;  %1299 = vmatprep.mubr.f32.mxu1 %v3456_v4  ;;  %1387 = vmatprep.mubr.f32.mxu0 %v3456_v4  ;;  %v1837_v23 = vsel %vm813_vm3, %v3375_v25, %v3389_v50  ;;  %v1838_v61 = vsel %vm813_vm3, %v3389_v50, %v3390_v34 }
 0x18e   :  { %v3380_v19 = vunpack.i.h.bf16 %v3378_v10  ;;  %v3379_v21 = vunpack.i.l.bf16 %v3378_v10  ;;  %v3393_v24 = vpop.permute.xlu0 %3392 }
 0x18f   :  { %v3395_v29 = vunpack.i.h.bf16 %v3393_v24  ;;  %v3394_v43 = vunpack.i.l.bf16 %v3393_v24  ;;  %2900 = vmatmul.mubr.msk.f32.gmra.mrb[6].mxu1 %vm402_vm7, %v2896_v22 }
 0x190   :  { %v1577_v41 = vsel %vm1077_vm4, %v3360_v14, %v3379_v21  ;;  %2903 = vmatmul.mubr.msk.f32.vlgmr.msra.gmra.mrb[4].mxu0 %vm402_vm7, %v2901_v16  ;;  %1464 = vmatprep.mubr.f32.mxu1 %v3456_v4  ;;  %v1578_v26 = vsel %vm1077_vm4, %v3379_v21, %v3380_v19 }
 0x191   :  { %v3082_v33 = vpack.c.bf16 %v1577_v41, %v1573_v6  ;;  %v1579_v38 = vsel %vm1077_vm4, %v3380_v19, %v3394_v43  ;;  %v3383_v52 = vpop.permute.xlu1 %3382  ;;  %1393 = vmatprep.mubr.f32.mxu0 %v3456_v4  ;;  %v3080_v56 = vpack.c.bf16 %v1578_v26, %v1574_v37  ;;  %v1580_v42 = vsel %vm1077_vm4, %v3394_v43, %v3395_v29  ;;  %v2916_v43 = vld [vmem:[%s4549_s4 + $0x68] sm:$0xff] }
 0x192   :  { %v3086_v57 = vpack.c.bf16 %v1579_v38, %v1575_v2  ;;  %v3385_v36 = vunpack.i.h.bf16 %v3383_v52  ;;  %v3384_v49 = vunpack.i.l.bf16 %v3383_v52  ;;  %v3398_v27 = vpop.permute.xlu0 %3397  ;;  %v3084_v53 = vpack.c.bf16 %v1580_v42, %v1576_v35 }
 0x193   :  { %v3400_v55 = vunpack.i.h.bf16 %v3398_v27  ;;  %v3399_v28 = vunpack.i.l.bf16 %v3398_v27  ;;  %2905 = vmatmul.mubr.msk.f32.vlgmr.msra.gmra.mrb[4].mxu1 %vm402_vm7, %v2901_v16  ;;  %3081 = vmatprep.subr.bf16.mxu0 %v3080_v56 }
 0x194   :  { %v1835_v62 = vsel %vm813_vm3, %v3384_v49, %v3374_v51  ;;  %2904 = vmatmul.mubr.msk.f32.gmra.mrb[6].mxu0 %vm402_vm7, %v2902_v5  ;;  %3085 = vmatprep.subr.bf16.mxu1 %v3084_v53 }
 0x195   :  { %v1839_v63 = vsel %vm813_vm3, %v3385_v36, %v3399_v28  ;;  %3083 = vmatpush1.bf16.msra.mxu0 %v3082_v33  ;;  %3087 = vmatpush1.bf16.msra.mxu1 %v3086_v57  ;;  %v3413_v60 = vpop.permute.xlu1 %3412  ;;  %v1840_v47 = vsel %vm813_vm3, %v3399_v28, %v3400_v55  ;;  %v2922_v57 = vld [vmem:[%s4549_s4 + $0x70] sm:$0xff]  ;;  %v2559_v28 = vld [vmem:[%s4550_s9 + $0x80] sm:$0xff] }
 0x196   :  { %v3090_v20 = vpack.c.bf16 %v1839_v63, %v1835_v62  ;;  %v3403_v13 = vpop.permute.xlu0 %3402  ;;  %1470 = vmatprep.mubr.f32.mxu1 %v3456_v4  ;;  %1659 = vmatprep.mubr.f32.mxu0 %v3456_v4  ;;  %v3088_v30 = vpack.c.bf16 %v1840_v47, %v1836_v11  ;;  %v3415_v8 = vunpack.i.h.bf16 %v3413_v60  ;;  %v3414_v31 = vunpack.i.l.bf16 %v3413_v60  ;;  %v2560_v62 = vld [vmem:[%s4550_s9 + $0x88] sm:$0xff] }
 0x197   :  { %2906 = vmatmul.mubr.msk.f32.gmra.mrb[6].mxu1 %vm402_vm7, %v2902_v5  ;;  %v3405_v59 = vunpack.i.h.bf16 %v3403_v13  ;;  %v3404_v3 = vunpack.i.l.bf16 %v3403_v13  ;;  %v2923_v13 = vld [vmem:[%s4549_s4 + $0x78] sm:$0xff] }
 0x198   :  { %2910 = vmatmul.mubr.msk.f32.vlgmr.msra.gmra.mrb[4].mxu0 %vm402_vm7, %v2908_v1  ;;  %3089 = vmatprep.subr.bf16.mxu0 %v3088_v30  ;;  %v2100_v0 = vsel %vm350_vm1, %v3414_v31, %v3415_v8  ;;  %v3112_v30 = vpack.c.bf16 %v2560_v62, %v2559_v28  ;;  %v2544_v8 = vld [vmem:[%s4550_s9 + $0x8] sm:$0xff]  ;;  %v2551_v28 = vld [vmem:[%s4550_s9 + $0x40] sm:$0xff]  ;;  %v2581_v62 = vld [vmem:[%s4550_s9 + $0x130] sm:$0xff] }
 0x199   :  { %3091 = vmatpush1.bf16.msra.mxu0 %v3090_v20  ;;  %v3418_v15 = vpop.permute.xlu1 %3417  ;;  %1665 = vmatprep.mubr.f32.mxu0 %v3456_v4  ;;  %v2099_v10 = vsel %vm350_vm1, %v3405_v59, %v3414_v31  ;;  %v2098_v2 = vsel %vm350_vm1, %v3404_v3, %v3405_v59  ;;  %v2591_v31 = vld [vmem:[%s4550_s9 + $0x180] sm:$0xff]  ;;  %v2561_v59 = vld [vmem:[%s4550_s9 + $0x90] sm:$0xff] }
 0x19a   :  { %v3420_v12 = vunpack.i.h.bf16 %v3418_v15  ;;  %v3419_v44 = vunpack.i.l.bf16 %v3418_v15  ;;  %v3408_v39 = vpop.permute.xlu0 %3407  ;;  %1736 = vmatprep.mubr.f32.mxu1 %v3456_v4  ;;  %v2543_v15 = vld [vmem:[%s4550_s9] sm:$0xff] }
 0x19b   :  { %2912 = vmatmul.mubr.msk.f32.vlgmr.msra.gmra.mrb[4].mxu1 %vm402_vm7, %v2908_v1  ;;  %v3409_v58 = vunpack.i.l.bf16 %v3408_v39  ;;  %v3410_v22 = vunpack.i.h.bf16 %v3408_v39 }
 0x19c   :  { %v1841_v18 = vsel %vm813_vm3, %v3400_v55, %v3419_v44  ;;  %2911 = vmatmul.mubr.msk.f32.gmra.mrb[6].mxu0 %vm402_vm7, %v2909_v17  ;;  %1742 = vmatprep.mubr.f32.mxu1 %v3456_v4  ;;  %v1842_v40 = vsel %vm813_vm3, %v3419_v44, %v3420_v12  ;;  %v2592_v12 = vld [vmem:[%s4550_s9 + $0x188] sm:$0xff] }
 0x19d   :  { %v3094_v54 = vpack.c.bf16 %v1841_v18, %v1837_v23  ;;  %v3423_v7 = vpop.permute.xlu1 %3422  ;;  %1921 = vmatprep.mubr.f32.mxu0 %v3456_v4  ;;  %v3092_v48 = vpack.c.bf16 %v1842_v40, %v1838_v61  ;;  %v2097_v14 = vsel %vm350_vm1, %v3409_v58, %v3404_v3  ;;  %v2562_v3 = vld [vmem:[%s4550_s9 + $0x98] sm:$0xff]  ;;  %v2929_v58 = vld [vmem:[%s4549_s4 + $0x80] sm:$0xff]  ;;  %v3114_v40 = vpack.c.bf16 %v2544_v8, %v2543_v15  ;;  %v2553_v15 = vld [vmem:[%s4550_s9 + $0x50] sm:$0xff] }
 0x19e   :  { %v3425_v46 = vunpack.i.h.bf16 %v3423_v7  ;;  %v3424_v45 = vunpack.i.l.bf16 %v3423_v7  ;;  %v3438_v9 = vpop.permute.xlu0 %3437  ;;  %v2545_v7 = vld [vmem:[%s4550_s9 + $0x10] sm:$0xff]  ;;  %v2584_v8 = vld [vmem:[%s4550_s9 + $0x148] sm:$0xff] }
 0x19f   :  { %v3440_v16 = vunpack.i.h.bf16 %v3438_v9  ;;  %v3439_v37 = vunpack.i.l.bf16 %v3438_v9  ;;  %2913 = vmatmul.mubr.msk.f32.gmra.mrb[6].mxu1 %vm402_vm7, %v2909_v17  ;;  %3093 = vmatprep.subr.bf16.mxu1 %v3092_v48  ;;  %v2576_v48 = vld [vmem:[%s4550_s9 + $0x108] sm:$0xff]  ;;  %v2594_v9 = vld [vmem:[%s4550_s9 + $0x198] sm:$0xff] }
 0x1a0   :  { %v2101_v19 = vsel %vm350_vm1, %v3410_v22, %v3424_v45  ;;  %2917 = vmatmul.mubr.msk.f32.vlgmr.msra.gmra.mrb[4].mxu0 %vm402_vm7, %v2915_v32  ;;  %3095 = vmatpush1.bf16.msra.mxu1 %v3094_v54  ;;  %v2102_v21 = vsel %vm350_vm1, %v3424_v45, %v3425_v46  ;;  %v3144_v54 = vpack.c.bf16 %v2592_v12, %v2591_v31  ;;  %v2593_v45 = vld [vmem:[%s4550_s9 + $0x190] sm:$0xff]  ;;  %v2554_v12 = vld [vmem:[%s4550_s9 + $0x58] sm:$0xff] }
 0x1a1   :  { %v3098_v24 = vpack.c.bf16 %v2101_v19, %v2097_v14  ;;  %v2103_v6 = vsel %vm350_vm1, %v3425_v46, %v3439_v37  ;;  %v3428_v29 = vpop.permute.xlu1 %3427  ;;  %1927 = vmatprep.mubr.f32.mxu0 %v3456_v4  ;;  %1998 = vmatprep.mubr.f32.mxu1 %v3456_v4  ;;  %v3096_v35 = vpack.c.bf16 %v2102_v21, %v2098_v2  ;;  %v2546_v46 = vld [vmem:[%s4550_s9 + $0x18] sm:$0xff]  ;;  %v2547_v19 = vld [vmem:[%s4550_s9 + $0x20] sm:$0xff]  ;;  %v2577_v21 = vld [vmem:[%s4550_s9 + $0x110] sm:$0xff] }
 0x1a2   :  { %v3102_v25 = vpack.c.bf16 %v2103_v6, %v2099_v10  ;;  %v3430_v51 = vunpack.i.h.bf16 %v3428_v29  ;;  %v3429_v41 = vunpack.i.l.bf16 %v3428_v29  ;;  %v3443_v26 = vpop.permute.xlu0 %3442  ;;  %v2104_v33 = vsel %vm350_vm1, %v3439_v37, %v3440_v16  ;;  %v2564_v10 = vld [vmem:[%s4550_s9 + $0xa8] sm:$0xff] }
 0x1a3   :  { %v3445_v38 = vunpack.i.h.bf16 %v3443_v26  ;;  %v3444_v52 = vunpack.i.l.bf16 %v3443_v26  ;;  %2919 = vmatmul.mubr.msk.f32.vlgmr.msra.gmra.mrb[4].mxu1 %vm402_vm7, %v2915_v32  ;;  %3097 = vmatprep.subr.bf16.mxu0 %v3096_v35  ;;  %v3100_v5 = vpack.c.bf16 %v2104_v33, %v2100_v0  ;;  %v2575_v32 = vld [vmem:[%s4550_s9 + $0x100] sm:$0xff]  ;;  %v3116_v22 = vpack.c.bf16 %v2562_v3, %v2561_v59  ;;  %v2930_v16 = vld [vmem:[%s4549_s4 + $0x88] sm:$0xff] }
 0x1a4   :  { %2918 = vmatmul.mubr.msk.f32.gmra.mrb[6].mxu0 %vm402_vm7, %v2916_v43  ;;  %2004 = vmatprep.mubr.f32.mxu1 %v3456_v4  ;;  %v2360_v56 = vsel %vm302_vm2, %v3429_v41, %v3430_v51  ;;  %v2563_v0 = vld [vmem:[%s4550_s9 + $0xa0] sm:$0xff]  ;;  %v3146_v37 = vpack.c.bf16 %v2576_v48, %v2575_v32  ;;  %v3118_v2 = vpack.c.bf16 %v2546_v46, %v2545_v7  ;;  %v2548_v29 = vld [vmem:[%s4550_s9 + $0x28] sm:$0xff]  ;;  %v2573_v46 = vld [vmem:[%s4550_s9 + $0xf0] sm:$0xff] }
 0x1a5   :  { %3101 = vmatprep.subr.bf16.mxu1 %v3100_v5  ;;  %3099 = vmatpush1.bf16.msra.mxu0 %v3098_v24  ;;  %v3433_v42 = vpop.permute.xlu1 %3432  ;;  %v2364_v36 = vsel %vm302_vm2, %v3444_v52, %v3445_v38  ;;  %v3148_v14 = vpack.c.bf16 %v2594_v9, %v2593_v45  ;;  %v2578_v24 = vld [vmem:[%s4550_s9 + $0x118] sm:$0xff]  ;;  %v3120_v6 = vpack.c.bf16 %v2564_v10, %v2563_v0  ;;  %v2596_v35 = vld [vmem:[%s4550_s9 + $0x1a8] sm:$0xff]  ;;  %v2603_v48 = vld [vmem:[%s4550_s9 + $0x1e0] sm:$0xff] }
 0x1a6   :  { %3103 = vmatpush1.bf16.msra.mxu1 %v3102_v25  ;;  %v3435_v49 = vunpack.i.h.bf16 %v3433_v42  ;;  %v3434_v27 = vunpack.i.l.bf16 %v3433_v42  ;;  %v3448_v53 = vpop.permute.xlu0 %3447  ;;  %2183 = vmatprep.mubr.f32.mxu0 %v3456_v4  ;;  %v3104_v55 = vpack.c.bf16 %v2364_v36, %v2360_v56  ;;  %v2565_v25 = vld [vmem:[%s4550_s9 + $0xb0] sm:$0xff]  ;;  %v3122_v26 = vpack.c.bf16 %v2548_v29, %v2547_v19  ;;  %v2550_v56 = vld [vmem:[%s4550_s9 + $0x38] sm:$0xff]  ;;  %v2567_v36 = vld [vmem:[%s4550_s9 + $0xc0] sm:$0xff] }
 0x1a7   :  { %v3449_v63 = vunpack.i.l.bf16 %v3448_v53  ;;  %2920 = vmatmul.mubr.msk.f32.gmra.mrb[6].mxu1 %vm402_vm7, %v2916_v43  ;;  %v3450_v11 = vunpack.i.h.bf16 %v3448_v53  ;;  %v2595_v43 = vld [vmem:[%s4550_s9 + $0x1a0] sm:$0xff]  ;;  %v2597_v42 = vld [vmem:[%s4550_s9 + $0x1b0] sm:$0xff]  ;;  %v2572_v59 = vld [vmem:[%s4550_s9 + $0xe8] sm:$0xff] }
 0x1a8   :  { %v2359_v60 = vsel %vm302_vm2, %v3434_v27, %v3429_v41  ;;  %v2363_v1 = vsel %vm302_vm2, %v3435_v49, %v3444_v52  ;;  %2924 = vmatmul.mubr.msk.f32.vlgmr.msra.gmra.mrb[4].mxu0 %vm402_vm7, %v2922_v57  ;;  %3105 = vmatprep.subr.bf16.mxu0 %v3104_v55  ;;  %v3150_v41 = vpack.c.bf16 %v2578_v24, %v2577_v21  ;;  %v2580_v52 = vld [vmem:[%s4550_s9 + $0x128] sm:$0xff]  ;;  %v2574_v45 = vld [vmem:[%s4550_s9 + $0xf8] sm:$0xff] }
 0x1a9   :  { %v3106_v47 = vpack.c.bf16 %v2363_v1, %v2359_v60  ;;  %v3453_v20 = vpop.permute.xlu1 %3452  ;;  %2189 = vmatprep.mubr.f32.mxu0 %v3456_v4  ;;  %2260 = vmatprep.mubr.f32.mxu1 %v3456_v4  ;;  %v2361_v17 = vsel %vm302_vm2, %v3430_v51, %v3449_v63  ;;  %v2362_v39 = vsel %vm302_vm2, %v3449_v63, %v3450_v11  ;;  %v2566_v51 = vld [vmem:[%s4550_s9 + $0xb8] sm:$0xff]  ;;  %v2568_v49 = vld [vmem:[%s4550_s9 + $0xc8] sm:$0xff]  ;;  %v2599_v11 = vld [vmem:[%s4550_s9 + $0x1c0] sm:$0xff] }
 0x1aa   :  { %v3455_v50 = vunpack.i.h.bf16 %v3453_v20  ;;  %v3454_v34 = vunpack.i.l.bf16 %v3453_v20  ;;  %v3152_v33 = vpack.c.bf16 %v2596_v35, %v2595_v43  ;;  %v3124_v5 = vpack.c.bf16 %v2566_v51, %v2565_v25  ;;  %v2582_v63 = vld [vmem:[%s4550_s9 + $0x138] sm:$0xff]  ;;  %v2552_v1 = vld [vmem:[%s4550_s9 + $0x48] sm:$0xff]  ;;  %v2569_v20 = vld [vmem:[%s4550_s9 + $0xd0] sm:$0xff] }
 0x1ab   :  { %2926 = vmatmul.mubr.msk.f32.vlgmr.msra.gmra.mrb[4].mxu1 %vm402_vm7, %v2922_v57  ;;  %3107 = vmatpush1.bf16.msra.mxu0 %v3106_v47  ;;  %v2598_v57 = vld [vmem:[%s4550_s9 + $0x1b8] sm:$0xff]  ;;  %v3128_v60 = vpack.c.bf16 %v2568_v49, %v2567_v36  ;;  %v2600_v47 = vld [vmem:[%s4550_s9 + $0x1c8] sm:$0xff]  ;;  %v2589_v35 = vld [vmem:[%s4550_s9 + $0x170] sm:$0xff] }
 0x1ac   :  { %v2365_v44 = vsel %vm302_vm2, %v3445_v38, %v3454_v34  ;;  %2925 = vmatmul.mubr.msk.f32.gmra.mrb[6].mxu0 %vm402_vm7, %v2923_v13  ;;  %2266 = vmatprep.mubr.f32.mxu1 %v3456_v4  ;;  %v2366_v23 = vsel %vm302_vm2, %v3454_v34, %v3455_v50  ;;  %v2549_v38 = vld [vmem:[%s4550_s9 + $0x30] sm:$0xff]  ;;  %v3156_v55 = vpack.c.bf16 %v2598_v57, %v2597_v42  ;;  %v2556_v32 = vld [vmem:[%s4550_s9 + $0x68] sm:$0xff]  ;;  %v2606_v29 = vld [vmem:[%s4550_s9 + $0x1f8] sm:$0xff] }
 0x1ad   :  { %v3110_v18 = vpack.c.bf16 %v2365_v44, %v2361_v17  ;;  %2445 = vmatprep.mubr.f32.mxu0 %v3456_v4  ;;  %v3108_v61 = vpack.c.bf16 %v2366_v23, %v2362_v39  ;;  %3113 = vmatprep.subr.bf16.mxu0 %v3112_v30  ;;  %v3126_v53 = vpack.c.bf16 %v2550_v56, %v2549_v38  ;;  %v2583_v17 = vld [vmem:[%s4550_s9 + $0x140] sm:$0xff]  ;;  %v2601_v44 = vld [vmem:[%s4550_s9 + $0x1d0] sm:$0xff]  ;;  %v2602_v39 = vld [vmem:[%s4550_s9 + $0x1d8] sm:$0xff] }
 0x1ae   :  { %v3158_v30 = vpack.c.bf16 %v2582_v63, %v2581_v62  ;;  %v3130_v50 = vpack.c.bf16 %v2552_v1, %v2551_v28  ;;  %v3160_v34 = vpack.c.bf16 %v2600_v47, %v2599_v11  ;;  %v2571_v23 = vld [vmem:[%s4550_s9 + $0xe0] sm:$0xff]  ;;  %v3162_v3 = vpack.c.bf16 %v2584_v8, %v2583_v17  ;;  %v2588_v21 = vld [vmem:[%s4550_s9 + $0x168] sm:$0xff]  ;;  %v2590_v25 = vld [vmem:[%s4550_s9 + $0x178] sm:$0xff] }
 0x1af   :  { %2927 = vmatmul.mubr.msk.f32.gmra.mrb[6].mxu1 %vm402_vm7, %v2923_v13  ;;  %3109 = vmatprep.subr.bf16.mxu1 %v3108_v61  ;;  %v2570_v13 = vld [vmem:[%s4550_s9 + $0xd8] sm:$0xff]  ;;  %v2555_v61 = vld [vmem:[%s4550_s9 + $0x60] sm:$0xff]  ;;  %v3136_v7 = vpack.c.bf16 %v2572_v59, %v2571_v23  ;;  %v3174_v51 = vpack.c.bf16 %v2590_v25, %v2589_v35  ;;  %v2770_v17 = vld [vmem:[%s4551_s6 + $0x8] sm:$0x3] }
 0x1b0   :  { %2931 = vmatmul.mubr.msk.f32.vlgmr.msra.gmra.mrb[4].mxu0 %vm402_vm7, %v2929_v58  ;;  %3111 = vmatpush1.bf16.msra.mxu1 %v3110_v18  ;;  %v3132_v31 = vpack.c.bf16 %v2570_v13, %v2569_v20  ;;  %v3134_v18 = vpack.c.bf16 %v2554_v12, %v2553_v15  ;;  %v3138_v0 = vpack.c.bf16 %v2556_v32, %v2555_v61  ;;  %v2769_v42 = vld [vmem:[%s4551_s6] sm:$0xff] }
 0x1b1   :  { %2451 = vmatprep.mubr.f32.mxu0 %v3456_v4  ;;  %2522 = vmatprep.mubr.f32.mxu1 %v3456_v4 }
 0x1b2   :  { %3115 = vmatpush3.bf16.msra.mxu0 %v3114_v40  ;;  %3145 = vmatprep.subr.bf16.mxu1 %v3144_v54  ;;  %v2585_v40 = vld [vmem:[%s4550_s9 + $0x150] sm:$0xff]  ;;  %v2586_v54 = vld [vmem:[%s4550_s9 + $0x158] sm:$0xff] }
 0x1b3   :  { %2933 = vmatmul.mubr.msk.f32.vlgmr.msra.gmra.mrb[4].mxu1 %vm402_vm7, %v2929_v58  ;;  %3117 = vmatprep.subr.bf16.mxu0 %v3116_v22  ;;  %v3164_v58 = vpack.c.bf16 %v2602_v39, %v2601_v44  ;;  %v2604_v22 = vld [vmem:[%s4550_s9 + $0x1e8] sm:$0xff]  ;;  %v3166_v9 = vpack.c.bf16 %v2586_v54, %v2585_v40 }
 0x1b4   :  { %2932 = vmatmul.mubr.msk.f32.gmra.mrb[6].mxu0 %vm402_vm7, %v2930_v16  ;;  %2528 = vmatprep.mubr.f32.mxu1 %v3456_v4  ;;  %v2579_v4 = vld [vmem:[%s4550_s9 + $0x120] sm:$0xff]  ;;  %v3168_v10 = vpack.c.bf16 %v2604_v22, %v2603_v48 }
 0x1b5   :  { %3147 = vmatpush3.bf16.msra.mxu1 %v3146_v37  ;;  %v3154_v27 = vpack.c.bf16 %v2580_v52, %v2579_v4  ;;  %v2557_v37 = vld [vmem:[%s4550_s9 + $0x70] sm:$0xff] }
 0x1b6   :  { %3119 = vmatpush3.bf16.msra.mxu0 %v3118_v2  ;;  %3149 = vmatprep.subr.bf16.mxu1 %v3148_v14  ;;  %v2558_v2 = vld [vmem:[%s4550_s9 + $0x78] sm:$0xff]  ;;  %v2587_v14 = vld [vmem:[%s4550_s9 + $0x160] sm:$0xff] }
 0x1b7   :  { %2934 = vmatmul.mubr.msk.f32.gmra.mrb[6].mxu1 %vm402_vm7, %v2930_v16  ;;  %3121 = vmatprep.subr.bf16.mxu0 %v3120_v6  ;;  %v3140_v16 = vpack.c.bf16 %v2574_v45, %v2573_v46  ;;  %v3142_v19 = vpack.c.bf16 %v2558_v2, %v2557_v37  ;;  %v3170_v24 = vpack.c.bf16 %v2588_v21, %v2587_v14  ;;  %v2605_v6 = vld [vmem:[%s4550_s9 + $0x1f0] sm:$0xff] }
 0x1b8   :  { %v3172_v43 = vpack.c.bf16 %v2606_v29, %v2605_v6 }
 0x1b9   :  { %3151 = vmatpush3.bf16.msra.mxu1 %v3150_v41 }
 0x1ba   :  { %3123 = vmatpush3.bf16.msra.mxu0 %v3122_v26  ;;  %3153 = vmatprep.subr.bf16.mxu1 %v3152_v33  ;;  %v2617_v20 = vpop.permute.xlu1 %2616 }
 0x1bb   :  { %3125 = vmatprep.subr.bf16.mxu0 %v3124_v5 }
 0x1bd   :  { %3155 = vmatpush3.bf16.msra.mxu1 %v3154_v27  ;;  %v2612_v27 = vpop.permute.xlu0 %2611 }
 0x1be   :  { %3127 = vmatpush3.bf16.msra.mxu0 %v3126_v53  ;;  %3157 = vmatprep.subr.bf16.mxu1 %v3156_v55  ;;  %v2781_v8 = vpop.permute.xlu1 %2780 }
 0x1bf   :  { %3129 = vmatprep.subr.bf16.mxu0 %v3128_v60 }
 0x1c1   :  { %3159 = vmatpush3.bf16.msra.mxu1 %v3158_v30  ;;  %v2776_v12 = vpop.permute.xlu0 %2775 }
 0x1c2   :  { %3131 = vmatpush3.bf16.msra.mxu0 %v3130_v50  ;;  %3161 = vmatprep.subr.bf16.mxu1 %v3160_v34 }
 0x1c3   :  { %3133 = vmatprep.subr.bf16.mxu0 %v3132_v31 }
 0x1c5   :  { %3163 = vmatpush3.bf16.msra.mxu1 %v3162_v3 }
 0x1c6   :  { %3135 = vmatpush3.bf16.msra.mxu0 %v3134_v18  ;;  %3165 = vmatprep.subr.bf16.mxu1 %v3164_v58 }
 0x1c7   :  { %3137 = vmatprep.subr.bf16.mxu0 %v3136_v7 }
 0x1c9   :  { %3167 = vmatpush3.bf16.msra.mxu1 %v3166_v9 }
 0x1ca   :  { %3139 = vmatpush3.bf16.msra.mxu0 %v3138_v0  ;;  %3169 = vmatprep.subr.bf16.mxu1 %v3168_v10 }
 0x1cb   :  { %3141 = vmatprep.subr.bf16.mxu0 %v3140_v16 }
 0x1cd   :  { %3171 = vmatpush3.bf16.msra.mxu1 %v3170_v24 }
 0x1ce   :  { %3143 = vmatpush3.bf16.msra.mxu0 %v3142_v19  ;;  %3173 = vmatprep.subr.bf16.mxu1 %v3172_v43 }
 0x1d1   :  { %3175 = vmatpush3.bf16.msra.mxu1 %v3174_v51 }
 0x283   :  { %v2447_v41 = vpop.f32.mrb[4].mxu0 }
 0x284   :  { %v2449_v26 = vpop.f32.mrb[5].mxu0 }
 0x285   :  { %2683 = vmatprep.mubr.f32.mxu0 %v2449_v26 }
 0x286   :  { %2684 = vmatmul.mubr.f32.vlgmr.msra.gmra.mrb[8].mxu0 %v2447_v41  ;;  %v2524_v33 = vpop.f32.mrb[4].mxu1 }
 0x287   :  { %v2453_v38 = vpop.f32.mrb[6].mxu0  ;;  %v2526_v4 = vpop.f32.mrb[5].mxu1 }
 0x288   :  { %v2455_v52 = vpop.f32.mrb[7].mxu0  ;;  %2758 = vmatprep.mubr.f32.mxu1 %v2526_v4 }
 0x289   :  { %2688 = vmatprep.mubr.f32.mxu0 %v2455_v52  ;;  %2759 = vmatmul.mubr.f32.vlgmr.msra.gmra.mrb[8].mxu1 %v2524_v33 }
 0x28a   :  { %2689 = vmatmul.mubr.f32.gmra.mrb[10].mxu0 %v2453_v38  ;;  %v2530_v5 = vpop.f32.mrb[6].mxu1 }
 0x28b   :  { %v2532_v56 = vpop.f32.mrb[7].mxu1  ;;  %3021 = vmatprep.mubr.msk.f32.mxu0 %vm402_vm7, %v2769_v42 }
 0x28c   :  { %2763 = vmatprep.mubr.f32.mxu1 %v2532_v56 }
 0x28d   :  { %2764 = vmatmul.mubr.f32.gmra.mrb[10].mxu1 %v2530_v5 }
 0x359   :  { %v2969_v57 = vpop.f32.mrb[8].mxu0 }
 0x35a   :  { %v2970_v36 = vpop.f32.mrb[9].mxu0 }
 0x35b   :  { %v2971_v49 = vadd.f32 %v2970_v36, %v2969_v57 }
 0x35c   :  { %v3007_v53 = vpop.f32.mrb[8].mxu1 }
 0x35d   :  { %v2972_v55 = vpop.f32.mrb[10].mxu0  ;;  %v3008_v28 = vpop.f32.mrb[9].mxu1  ;;  %v2686_v62 = vadd.f32 %v2971_v49, %v2612_v27 }
 0x35e   :  { %v2973_v63 = vpop.f32.mrb[11].mxu0  ;;  %v3009_v60 = vadd.f32 %v3008_v28, %v3007_v53 }
 0x35f   :  { %v2974_v1 = vadd.f32 %v2973_v63, %v2972_v55 }
 0x360   :  { %v2761_v11 = vadd.f32 %v3009_v60, %v2686_v62  ;;  %v3010_v47 = vpop.f32.mrb[10].mxu1 }
 0x361   :  { %v3011_v13 = vpop.f32.mrb[11].mxu1  ;;  %v2691_v30 = vadd.f32 %v2974_v1, %v2617_v20 }
 0x362   :  { %v3012_v50 = vadd.f32 %v3011_v13, %v3010_v47 }
 0x364   :  { %v2766_v34 = vadd.f32 %v3012_v50, %v2691_v30 }
 0x366   :  { %v3176_v15 = vpack.c.bf16 %v2766_v34, %v2761_v11 }
 0x368   :  { %3177 = vmatprep.subr.bf16.mxu0 %v3176_v15 }
 0x369   :  { %3179 = vmatpush3.bf16.msra.mxu0 %v3176_v15 }
 0x36c   :  { %3022 = vmatmul.mubr.msk.f32.vlgmr.msra.gmra.mrb[12].mxu0 %vm402_vm7, %v2770_v17 }
 0x43f   :  { %v3023_v31 = vpop.f32.mrb[12].mxu0 }
 0x440   :  { %v2861_v44 = vadd.f32 %v3023_v31, %v2781_v8  ;;  %v2855_v39 = vpop.f32.mrb[13].mxu0 }
 0x441   :  { %v2856_v23 = vadd.f32 %v2855_v39, %v2776_v12 }
 0x442   :  { %2867 = vst.msk [vmem:[%s4552_s10 + $0x8] sm:$0x3] %vm2866_vm9, %v2861_v44 }
 0x443   :  { %2865 = vst.msk [vmem:[%s4552_s10] sm:$0xff] %vm2864_vm10, %v2856_v23 }

</bundles_post_ra>
